<compile_context>
chip_gen: v7x
topology: tpu7x:2x2x1
jax: 0.10.0
libtpu: 0.0.40
codegen_flags: <defaults>
</compile_context>

<pallas_src>
import functools
import math

import jax
import jax.numpy as jnp
from jax.experimental import pallas as pl
from jax.experimental.pallas import tpu as pltpu


# ----------------------------------------------------------------------------
# Shared math helpers (used by both the Pallas kernel and the JAX reference)
# ----------------------------------------------------------------------------
def _layer_norm(x, gamma, beta, eps=1e-6):
    mean = jnp.mean(x, axis=-1, keepdims=True)
    var = jnp.mean(jnp.square(x - mean), axis=-1, keepdims=True)
    return (x - mean) * jax.lax.rsqrt(var + eps) * gamma + beta


def _gelu(x):
    # PreSumm-style tanh-approximation gelu (matches the module's `gelu`).
    return 0.5 * x * (1.0 + jnp.tanh(
        math.sqrt(2.0 / math.pi) * (x + 0.044715 * x * x * x)))


# ----------------------------------------------------------------------------
# Fused encoder-layer kernel (one grid step == one batch element)
# ----------------------------------------------------------------------------
def _encoder_layer_kernel(
    x_ref, mask_ref,
    ln1_g_ref, ln1_b_ref,
    wq_ref, bq_ref, wk_ref, bk_ref, wv_ref, bv_ref, wo_ref, bo_ref,
    ln2_g_ref, ln2_b_ref,
    w1_ref, b1_ref, w2_ref, b2_ref,
    out_ref,
    *, apply_pre_ln: bool, num_heads: int, head_dim: int,
):
    x = x_ref[...].astype(jnp.float32)          # (S, D)
    mask = mask_ref[...].astype(jnp.float32)    # (1, S) additive key mask

    # --- optional pre-LayerNorm: `if iter != 0` branch of the module --------
    if apply_pre_ln:
        xn = _layer_norm(x, ln1_g_ref[...], ln1_b_ref[...])
    else:
        xn = x

    # --- multi-head self-attention ------------------------------------------
    q = jnp.dot(xn, wq_ref[...], preferred_element_type=jnp.float32) + bq_ref[...]
    k = jnp.dot(xn, wk_ref[...], preferred_element_type=jnp.float32) + bk_ref[...]
    v = jnp.dot(xn, wv_ref[...], preferred_element_type=jnp.float32) + bv_ref[...]

    scale = 1.0 / math.sqrt(head_dim)
    ctx_heads = []
    for h in range(num_heads):                  # static unroll over heads
        lo = h * head_dim
        hi = lo + head_dim
        qh = q[:, lo:hi] * scale                # (S, dh)
        kh = k[:, lo:hi]                        # (S, dh)
        vh = v[:, lo:hi]                        # (S, dh)
        scores = jnp.einsum("qd,kd->qk", qh, kh,
                            preferred_element_type=jnp.float32)   # (S, S)
        scores = scores + mask                  # (1,S) broadcasts over queries
        scores = scores - jnp.max(scores, axis=-1, keepdims=True)
        p = jnp.exp(scores)
        p = p / jnp.sum(p, axis=-1, keepdims=True)
        ctx_heads.append(
            jnp.dot(p, vh, preferred_element_type=jnp.float32))   # (S, dh)
    ctx = jnp.concatenate(ctx_heads, axis=-1)   # (S, D)

    attn_out = jnp.dot(ctx, wo_ref[...],
                       preferred_element_type=jnp.float32) + bo_ref[...]

    # dropout(context) is identity in eval mode; residual uses ORIGINAL inputs
    h_res = attn_out + x

    # --- PositionwiseFeedForward: LN -> w_1 -> gelu -> w_2 -> +residual -----
    ffn_in = _layer_norm(h_res, ln2_g_ref[...], ln2_b_ref[...])
    inter = _gelu(jnp.dot(ffn_in, w1_ref[...],
                          preferred_element_type=jnp.float32) + b1_ref[...])
    ffn_out = jnp.dot(inter, w2_ref[...],
                      preferred_element_type=jnp.float32) + b2_ref[...]

    out_ref[...] = (ffn_out + h_res).astype(out_ref.dtype)


# ----------------------------------------------------------------------------
# Wrapper
# ----------------------------------------------------------------------------
def long_transformer_encoder_layer(iteration, x, attention_mask, params,
                                   *, num_heads):
    """x: [B, S, D]; attention_mask: [B, S] additive (0 = attend, -1e9 = pad)."""
    B, S, D = x.shape
    inter_size = params["w1"].shape[1]
    assert D % num_heads == 0, "hidden_size must be divisible by num_heads"
    head_dim = D // num_heads

    def as_row(v):                              # (N,) -> (1, N) lane vector
        return v.reshape(1, -1).astype(jnp.float32)

    mask3 = attention_mask.reshape(B, 1, S).astype(x.dtype)

    kernel = functools.partial(
        _encoder_layer_kernel,
        apply_pre_ln=(iteration != 0),
        num_heads=num_heads,
        head_dim=head_dim,
    )

    def full2d(shape):                          # whole-array block, loaded once
        return pl.BlockSpec(shape, lambda b: (0, 0))

    grid_spec = pltpu.PrefetchScalarGridSpec(
        num_scalar_prefetch=0,
        grid=(B,),
        in_specs=[
            pl.BlockSpec((None, S, D), lambda b: (b, 0, 0)),   # x (batch squeezed)
            pl.BlockSpec((None, 1, S), lambda b: (b, 0, 0)),   # mask
            full2d((1, D)), full2d((1, D)),                    # ln1 gamma/beta
            full2d((D, D)), full2d((1, D)),                    # wq, bq
            full2d((D, D)), full2d((1, D)),                    # wk, bk
            full2d((D, D)), full2d((1, D)),                    # wv, bv
            full2d((D, D)), full2d((1, D)),                    # wo, bo
            full2d((1, D)), full2d((1, D)),                    # ln2 gamma/beta
            full2d((D, inter_size)), full2d((1, inter_size)),  # w1, b1
            full2d((inter_size, D)), full2d((1, D)),           # w2, b2
        ],
        out_specs=pl.BlockSpec((None, S, D), lambda b: (b, 0, 0)),
    )

    return pl.pallas_call(
        kernel,
        out_shape=jax.ShapeDtypeStruct((B, S, D), x.dtype),
        grid_spec=grid_spec,
        compiler_params=pltpu.CompilerParams(
            dimension_semantics=("parallel",),
        ),
    )(
        x, mask3,
        as_row(params["ln1_g"]), as_row(params["ln1_b"]),
        params["wq"], as_row(params["bq"]),
        params["wk"], as_row(params["bk"]),
        params["wv"], as_row(params["bv"]),
        params["wo"], as_row(params["bo"]),
        as_row(params["ln2_g"]), as_row(params["ln2_b"]),
        params["w1"], as_row(params["b1"]),
        params["w2"], as_row(params["b2"]),
    )


# ----------------------------------------------------------------------------
# Pure-JAX reference (same math, HIGHEST matmul precision)
# ----------------------------------------------------------------------------
def _layer_ref(x, mask, p, *, iteration, num_heads):
    B, S, D = x.shape
    dh = D // num_heads
    hp = jax.lax.Precision.HIGHEST

    xn = _layer_norm(x, p["ln1_g"], p["ln1_b"]) if iteration != 0 else x
    q = jnp.einsum("bsd,de->bse", xn, p["wq"], precision=hp) + p["bq"]
    k = jnp.einsum("bsd,de->bse", xn, p["wk"], precision=hp) + p["bk"]
    v = jnp.einsum("bsd,de->bse", xn, p["wv"], precision=hp) + p["bv"]
    q = q.reshape(B, S, num_heads, dh).transpose(0, 2, 1, 3) / math.sqrt(dh)
    k = k.reshape(B, S, num_heads, dh).transpose(0, 2, 1, 3)
    v = v.reshape(B, S, num_heads, dh).transpose(0, 2, 1, 3)
    scores = jnp.einsum("bhqd,bhkd->bhqk", q, k, precision=hp)
    scores = scores + mask[:, None, None, :]
    probs = jax.nn.softmax(scores, axis=-1)
    ctx = jnp.einsum("bhqk,bhkd->bhqd", probs, v, precision=hp)
    ctx = ctx.transpose(0, 2, 1, 3).reshape(B, S, D)
    attn = jnp.einsum("bsd,de->bse", ctx, p["wo"], precision=hp) + p["bo"]
    h = attn + x
    ffn_in = _layer_norm(h, p["ln2_g"], p["ln2_b"])
    inter = _gelu(jnp.einsum("bsd,di->bsi", ffn_in, p["w1"], precision=hp) + p["b1"])
    ffn = jnp.einsum("bsi,id->bsd", inter, p["w2"], precision=hp) + p["b2"]
    return ffn + h


if __name__ == "__main__":
    key = jax.random.PRNGKey(0)
    B, S, D, H, I = 2, 8, 128, 4, 256   # hidden=128 -> lane-dense activations
    ks = jax.random.split(key, 20)

    def w(k, shape, scale=0.02):
        return scale * jax.random.normal(k, shape, dtype=jnp.float32)

    x = jax.random.normal(ks[0], (B, S, D), dtype=jnp.float32)

    # Additive attention mask over key positions: 0 = attend, -1e9 = padding.
    attention_mask = jnp.zeros((B, S), dtype=jnp.float32)
    attention_mask = attention_mask.at[1, S - 2:].set(-1e9)

    params = {
        "ln1_g": 1.0 + w(ks[1], (D,), 0.1), "ln1_b": w(ks[2], (D,), 0.1),
        "wq": w(ks[3], (D, D)), "bq": w(ks[4], (D,), 0.01),
        "wk": w(ks[5], (D, D)), "bk": w(ks[6], (D,), 0.01),
        "wv": w(ks[7], (D, D)), "bv": w(ks[8], (D,), 0.01),
        "wo": w(ks[9], (D, D)), "bo": w(ks[10], (D,), 0.01),
        "ln2_g": 1.0 + w(ks[11], (D,), 0.1), "ln2_b": w(ks[12], (D,), 0.1),
        "w1": w(ks[13], (D, I)), "b1": w(ks[14], (I,), 0.01),
        "w2": w(ks[15], (I, D)), "b2": w(ks[16], (D,), 0.01),
    }

    iteration = 1   # exercise the `iter != 0` pre-LayerNorm branch

    out = long_transformer_encoder_layer(iteration, x, attention_mask, params,
                                         num_heads=H)
    out = jax.block_until_ready(out)

    ref = _layer_ref(x, attention_mask, params, iteration=iteration, num_heads=H)
    assert out.shape == (B, S, D)
    max_err = float(jnp.max(jnp.abs(out - ref)))
    assert jnp.allclose(out, ref, atol=5e-3, rtol=5e-3), \
        f"mismatch vs reference: max|diff|={max_err}"

    print("KERNEL_OK")
</pallas_src>

<mosaic_0001>
module attributes {stable_mosaic.version = 11 : i64} {
  func.func @_encoder_layer_kernel(%arg0: i32, %arg1: memref<1x8x128xf32, #tpu.memory_space<vmem>>, %arg2: memref<1x1x8xf32, #tpu.memory_space<vmem>>, %arg3: memref<1x128xf32, #tpu.memory_space<vmem>>, %arg4: memref<1x128xf32, #tpu.memory_space<vmem>>, %arg5: memref<128x128xf32, #tpu.memory_space<vmem>>, %arg6: memref<1x128xf32, #tpu.memory_space<vmem>>, %arg7: memref<128x128xf32, #tpu.memory_space<vmem>>, %arg8: memref<1x128xf32, #tpu.memory_space<vmem>>, %arg9: memref<128x128xf32, #tpu.memory_space<vmem>>, %arg10: memref<1x128xf32, #tpu.memory_space<vmem>>, %arg11: memref<128x128xf32, #tpu.memory_space<vmem>>, %arg12: memref<1x128xf32, #tpu.memory_space<vmem>>, %arg13: memref<1x128xf32, #tpu.memory_space<vmem>>, %arg14: memref<1x128xf32, #tpu.memory_space<vmem>>, %arg15: memref<128x256xf32, #tpu.memory_space<vmem>>, %arg16: memref<1x256xf32, #tpu.memory_space<vmem>>, %arg17: memref<256x128xf32, #tpu.memory_space<vmem>>, %arg18: memref<1x128xf32, #tpu.memory_space<vmem>>, %arg19: memref<1x8x128xf32, #tpu.memory_space<vmem>>) attributes {dimension_semantics = [#tpu.dimension_semantics<parallel>], iteration_bounds = array<i64: 2>, scalar_prefetch = 0 : i64, scratch_operands = 0 : i64, tpu.core_type = #tpu.core_type<tc>, window_params = [{transform_indices = @transform_0, window_bounds = array<i64: 1, 8, 128>}, {transform_indices = @transform_1, window_bounds = array<i64: 1, 1, 8>}, {pipeline_mode = #tpu.pipeline_mode<synchronous>, transform_indices = @transform_2, window_bounds = array<i64: 1, 128>}, {pipeline_mode = #tpu.pipeline_mode<synchronous>, transform_indices = @transform_3, window_bounds = array<i64: 1, 128>}, {pipeline_mode = #tpu.pipeline_mode<synchronous>, transform_indices = @transform_4, window_bounds = array<i64: 128, 128>}, {pipeline_mode = #tpu.pipeline_mode<synchronous>, transform_indices = @transform_5, window_bounds = array<i64: 1, 128>}, {pipeline_mode = #tpu.pipeline_mode<synchronous>, transform_indices = @transform_6, window_bounds = array<i64: 128, 128>}, {pipeline_mode = #tpu.pipeline_mode<synchronous>, transform_indices = @transform_7, window_bounds = array<i64: 1, 128>}, {pipeline_mode = #tpu.pipeline_mode<synchronous>, transform_indices = @transform_8, window_bounds = array<i64: 128, 128>}, {pipeline_mode = #tpu.pipeline_mode<synchronous>, transform_indices = @transform_9, window_bounds = array<i64: 1, 128>}, {pipeline_mode = #tpu.pipeline_mode<synchronous>, transform_indices = @transform_10, window_bounds = array<i64: 128, 128>}, {pipeline_mode = #tpu.pipeline_mode<synchronous>, transform_indices = @transform_11, window_bounds = array<i64: 1, 128>}, {pipeline_mode = #tpu.pipeline_mode<synchronous>, transform_indices = @transform_12, window_bounds = array<i64: 1, 128>}, {pipeline_mode = #tpu.pipeline_mode<synchronous>, transform_indices = @transform_13, window_bounds = array<i64: 1, 128>}, {pipeline_mode = #tpu.pipeline_mode<synchronous>, transform_indices = @transform_14, window_bounds = array<i64: 128, 256>}, {pipeline_mode = #tpu.pipeline_mode<synchronous>, transform_indices = @transform_15, window_bounds = array<i64: 1, 256>}, {pipeline_mode = #tpu.pipeline_mode<synchronous>, transform_indices = @transform_16, window_bounds = array<i64: 256, 128>}, {pipeline_mode = #tpu.pipeline_mode<synchronous>, transform_indices = @transform_17, window_bounds = array<i64: 1, 128>}, {transform_indices = @transform_18, window_bounds = array<i64: 1, 8, 128>}]} {
    %c0 = arith.constant 0 : index
    %c0_0 = arith.constant 0 : index
    %c0_1 = arith.constant 0 : index
    %0 = vector.load %arg1[%c0, %c0_0, %c0_1] : memref<1x8x128xf32, #tpu.memory_space<vmem>>, vector<1x8x128xf32>
    %1 = vector.shape_cast %0 : vector<1x8x128xf32> to vector<8x128xf32>
    %c0_2 = arith.constant 0 : index
    %c0_3 = arith.constant 0 : index
    %c0_4 = arith.constant 0 : index
    %2 = vector.load %arg2[%c0_2, %c0_3, %c0_4] : memref<1x1x8xf32, #tpu.memory_space<vmem>>, vector<1x1x8xf32>
    %3 = vector.shape_cast %2 : vector<1x1x8xf32> to vector<1x8xf32>
    %c0_5 = arith.constant 0 : index
    %c0_6 = arith.constant 0 : index
    %4 = vector.load %arg3[%c0_5, %c0_6] : memref<1x128xf32, #tpu.memory_space<vmem>>, vector<1x128xf32>
    %c0_7 = arith.constant 0 : index
    %c0_8 = arith.constant 0 : index
    %5 = vector.load %arg4[%c0_7, %c0_8] : memref<1x128xf32, #tpu.memory_space<vmem>>, vector<1x128xf32>
    %cst = arith.constant dense<0.000000e+00> : vector<8xf32>
    %6 = vector.multi_reduction <add>, %1, %cst [1] : vector<8x128xf32> to vector<8xf32>
    %7 = vector.shape_cast %6 : vector<8xf32> to vector<8x1xf32>
    %cst_9 = arith.constant 1.280000e+02 : f32
    %8 = vector.broadcast %cst_9 : f32 to vector<8x1xf32>
    %9 = arith.divf %7, %8 : vector<8x1xf32>
    %10 = vector.broadcast %9 : vector<8x1xf32> to vector<8x128xf32>
    %11 = arith.subf %1, %10 : vector<8x128xf32>
    %12 = arith.mulf %11, %11 : vector<8x128xf32>
    %cst_10 = arith.constant dense<0.000000e+00> : vector<8xf32>
    %13 = vector.multi_reduction <add>, %12, %cst_10 [1] : vector<8x128xf32> to vector<8xf32>
    %14 = vector.shape_cast %13 : vector<8xf32> to vector<8x1xf32>
    %cst_11 = arith.constant 1.280000e+02 : f32
    %15 = vector.broadcast %cst_11 : f32 to vector<8x1xf32>
    %16 = arith.divf %14, %15 : vector<8x1xf32>
    %17 = vector.broadcast %9 : vector<8x1xf32> to vector<8x128xf32>
    %18 = arith.subf %1, %17 : vector<8x128xf32>
    %cst_12 = arith.constant 9.99999997E-7 : f32
    %19 = vector.broadcast %cst_12 : f32 to vector<8x1xf32>
    %20 = arith.addf %16, %19 : vector<8x1xf32>
    %21 = math.rsqrt %20 : vector<8x1xf32>
    %22 = vector.broadcast %21 : vector<8x1xf32> to vector<8x128xf32>
    %23 = arith.mulf %18, %22 : vector<8x128xf32>
    %24 = vector.broadcast %4 : vector<1x128xf32> to vector<8x128xf32>
    %25 = arith.mulf %23, %24 : vector<8x128xf32>
    %26 = vector.broadcast %5 : vector<1x128xf32> to vector<8x128xf32>
    %27 = arith.addf %25, %26 : vector<8x128xf32>
    %c0_13 = arith.constant 0 : index
    %c0_14 = arith.constant 0 : index
    %28 = vector.load %arg5[%c0_13, %c0_14] : memref<128x128xf32, #tpu.memory_space<vmem>>, vector<128x128xf32>
    %cst_15 = arith.constant dense<0.000000e+00> : vector<8x128xf32>
    %29 = tpu.matmul %27, %28, %cst_15 {dimension_numbers = #tpu.dot_dimension_numbers<[1], [0], [0], [1], [0, 0, 1, 1], [], []>} : vector<8x128xf32>, vector<128x128xf32>, vector<8x128xf32> -> vector<8x128xf32>
    %c0_16 = arith.constant 0 : index
    %c0_17 = arith.constant 0 : index
    %30 = vector.load %arg6[%c0_16, %c0_17] : memref<1x128xf32, #tpu.memory_space<vmem>>, vector<1x128xf32>
    %31 = vector.broadcast %30 : vector<1x128xf32> to vector<8x128xf32>
    %32 = arith.addf %29, %31 : vector<8x128xf32>
    %c0_18 = arith.constant 0 : index
    %c0_19 = arith.constant 0 : index
    %33 = vector.load %arg7[%c0_18, %c0_19] : memref<128x128xf32, #tpu.memory_space<vmem>>, vector<128x128xf32>
    %cst_20 = arith.constant dense<0.000000e+00> : vector<8x128xf32>
    %34 = tpu.matmul %27, %33, %cst_20 {dimension_numbers = #tpu.dot_dimension_numbers<[1], [0], [0], [1], [0, 0, 1, 1], [], []>} : vector<8x128xf32>, vector<128x128xf32>, vector<8x128xf32> -> vector<8x128xf32>
    %c0_21 = arith.constant 0 : index
    %c0_22 = arith.constant 0 : index
    %35 = vector.load %arg8[%c0_21, %c0_22] : memref<1x128xf32, #tpu.memory_space<vmem>>, vector<1x128xf32>
    %36 = vector.broadcast %35 : vector<1x128xf32> to vector<8x128xf32>
    %37 = arith.addf %34, %36 : vector<8x128xf32>
    %c0_23 = arith.constant 0 : index
    %c0_24 = arith.constant 0 : index
    %38 = vector.load %arg9[%c0_23, %c0_24] : memref<128x128xf32, #tpu.memory_space<vmem>>, vector<128x128xf32>
    %cst_25 = arith.constant dense<0.000000e+00> : vector<8x128xf32>
    %39 = tpu.matmul %27, %38, %cst_25 {dimension_numbers = #tpu.dot_dimension_numbers<[1], [0], [0], [1], [0, 0, 1, 1], [], []>} : vector<8x128xf32>, vector<128x128xf32>, vector<8x128xf32> -> vector<8x128xf32>
    %c0_26 = arith.constant 0 : index
    %c0_27 = arith.constant 0 : index
    %40 = vector.load %arg10[%c0_26, %c0_27] : memref<1x128xf32, #tpu.memory_space<vmem>>, vector<1x128xf32>
    %41 = vector.broadcast %40 : vector<1x128xf32> to vector<8x128xf32>
    %42 = arith.addf %39, %41 : vector<8x128xf32>
    %43 = vector.extract_strided_slice %32 {offsets = [0, 0], sizes = [8, 32], strides = [1, 1]} : vector<8x128xf32> to vector<8x32xf32>
    %cst_28 = arith.constant 0.176776692 : f32
    %44 = vector.broadcast %cst_28 : f32 to vector<8x32xf32>
    %45 = arith.mulf %43, %44 : vector<8x32xf32>
    %46 = vector.extract_strided_slice %37 {offsets = [0, 0], sizes = [8, 32], strides = [1, 1]} : vector<8x128xf32> to vector<8x32xf32>
    %47 = vector.extract_strided_slice %42 {offsets = [0, 0], sizes = [8, 32], strides = [1, 1]} : vector<8x128xf32> to vector<8x32xf32>
    "tpu.trace_start"() <{level = 10 : i32, message = "qd,kd->qk"}> : () -> ()
    %cst_29 = arith.constant dense<0.000000e+00> : vector<8x8xf32>
    %48 = tpu.matmul %45, %46, %cst_29 {dimension_numbers = #tpu.dot_dimension_numbers<[1], [1], [0], [0], [0, 0, 1, 0], [], []>} : vector<8x32xf32>, vector<8x32xf32>, vector<8x8xf32> -> vector<8x8xf32>
    "tpu.trace_stop"() : () -> ()
    %49 = vector.broadcast %3 : vector<1x8xf32> to vector<8x8xf32>
    %50 = arith.addf %48, %49 : vector<8x8xf32>
    %cst_30 = arith.constant dense<0xFF800000> : vector<8xf32>
    %51 = vector.multi_reduction <maximumf>, %50, %cst_30 [1] : vector<8x8xf32> to vector<8xf32>
    %52 = vector.shape_cast %51 : vector<8xf32> to vector<8x1xf32>
    %53 = vector.broadcast %52 : vector<8x1xf32> to vector<8x8xf32>
    %54 = arith.subf %50, %53 : vector<8x8xf32>
    %55 = math.exp %54 : vector<8x8xf32>
    %cst_31 = arith.constant dense<0.000000e+00> : vector<8xf32>
    %56 = vector.multi_reduction <add>, %55, %cst_31 [1] : vector<8x8xf32> to vector<8xf32>
    %57 = vector.shape_cast %56 : vector<8xf32> to vector<8x1xf32>
    %58 = vector.broadcast %57 : vector<8x1xf32> to vector<8x8xf32>
    %59 = arith.divf %55, %58 : vector<8x8xf32>
    %cst_32 = arith.constant dense<0.000000e+00> : vector<8x32xf32>
    %60 = tpu.matmul %59, %47, %cst_32 {dimension_numbers = #tpu.dot_dimension_numbers<[1], [0], [0], [1], [0, 0, 1, 1], [], []>} : vector<8x8xf32>, vector<8x32xf32>, vector<8x32xf32> -> vector<8x32xf32>
    %61 = vector.extract_strided_slice %32 {offsets = [0, 32], sizes = [8, 32], strides = [1, 1]} : vector<8x128xf32> to vector<8x32xf32>
    %cst_33 = arith.constant 0.176776692 : f32
    %62 = vector.broadcast %cst_33 : f32 to vector<8x32xf32>
    %63 = arith.mulf %61, %62 : vector<8x32xf32>
    %64 = vector.extract_strided_slice %37 {offsets = [0, 32], sizes = [8, 32], strides = [1, 1]} : vector<8x128xf32> to vector<8x32xf32>
    %65 = vector.extract_strided_slice %42 {offsets = [0, 32], sizes = [8, 32], strides = [1, 1]} : vector<8x128xf32> to vector<8x32xf32>
    "tpu.trace_start"() <{level = 10 : i32, message = "qd,kd->qk"}> : () -> ()
    %cst_34 = arith.constant dense<0.000000e+00> : vector<8x8xf32>
    %66 = tpu.matmul %63, %64, %cst_34 {dimension_numbers = #tpu.dot_dimension_numbers<[1], [1], [0], [0], [0, 0, 1, 0], [], []>} : vector<8x32xf32>, vector<8x32xf32>, vector<8x8xf32> -> vector<8x8xf32>
    "tpu.trace_stop"() : () -> ()
    %67 = vector.broadcast %3 : vector<1x8xf32> to vector<8x8xf32>
    %68 = arith.addf %66, %67 : vector<8x8xf32>
    %cst_35 = arith.constant dense<0xFF800000> : vector<8xf32>
    %69 = vector.multi_reduction <maximumf>, %68, %cst_35 [1] : vector<8x8xf32> to vector<8xf32>
    %70 = vector.shape_cast %69 : vector<8xf32> to vector<8x1xf32>
    %71 = vector.broadcast %70 : vector<8x1xf32> to vector<8x8xf32>
    %72 = arith.subf %68, %71 : vector<8x8xf32>
    %73 = math.exp %72 : vector<8x8xf32>
    %cst_36 = arith.constant dense<0.000000e+00> : vector<8xf32>
    %74 = vector.multi_reduction <add>, %73, %cst_36 [1] : vector<8x8xf32> to vector<8xf32>
    %75 = vector.shape_cast %74 : vector<8xf32> to vector<8x1xf32>
    %76 = vector.broadcast %75 : vector<8x1xf32> to vector<8x8xf32>
    %77 = arith.divf %73, %76 : vector<8x8xf32>
    %cst_37 = arith.constant dense<0.000000e+00> : vector<8x32xf32>
    %78 = tpu.matmul %77, %65, %cst_37 {dimension_numbers = #tpu.dot_dimension_numbers<[1], [0], [0], [1], [0, 0, 1, 1], [], []>} : vector<8x8xf32>, vector<8x32xf32>, vector<8x32xf32> -> vector<8x32xf32>
    %79 = vector.extract_strided_slice %32 {offsets = [0, 64], sizes = [8, 32], strides = [1, 1]} : vector<8x128xf32> to vector<8x32xf32>
    %cst_38 = arith.constant 0.176776692 : f32
    %80 = vector.broadcast %cst_38 : f32 to vector<8x32xf32>
    %81 = arith.mulf %79, %80 : vector<8x32xf32>
    %82 = vector.extract_strided_slice %37 {offsets = [0, 64], sizes = [8, 32], strides = [1, 1]} : vector<8x128xf32> to vector<8x32xf32>
    %83 = vector.extract_strided_slice %42 {offsets = [0, 64], sizes = [8, 32], strides = [1, 1]} : vector<8x128xf32> to vector<8x32xf32>
    "tpu.trace_start"() <{level = 10 : i32, message = "qd,kd->qk"}> : () -> ()
    %cst_39 = arith.constant dense<0.000000e+00> : vector<8x8xf32>
    %84 = tpu.matmul %81, %82, %cst_39 {dimension_numbers = #tpu.dot_dimension_numbers<[1], [1], [0], [0], [0, 0, 1, 0], [], []>} : vector<8x32xf32>, vector<8x32xf32>, vector<8x8xf32> -> vector<8x8xf32>
    "tpu.trace_stop"() : () -> ()
    %85 = vector.broadcast %3 : vector<1x8xf32> to vector<8x8xf32>
    %86 = arith.addf %84, %85 : vector<8x8xf32>
    %cst_40 = arith.constant dense<0xFF800000> : vector<8xf32>
    %87 = vector.multi_reduction <maximumf>, %86, %cst_40 [1] : vector<8x8xf32> to vector<8xf32>
    %88 = vector.shape_cast %87 : vector<8xf32> to vector<8x1xf32>
    %89 = vector.broadcast %88 : vector<8x1xf32> to vector<8x8xf32>
    %90 = arith.subf %86, %89 : vector<8x8xf32>
    %91 = math.exp %90 : vector<8x8xf32>
    %cst_41 = arith.constant dense<0.000000e+00> : vector<8xf32>
    %92 = vector.multi_reduction <add>, %91, %cst_41 [1] : vector<8x8xf32> to vector<8xf32>
    %93 = vector.shape_cast %92 : vector<8xf32> to vector<8x1xf32>
    %94 = vector.broadcast %93 : vector<8x1xf32> to vector<8x8xf32>
    %95 = arith.divf %91, %94 : vector<8x8xf32>
    %cst_42 = arith.constant dense<0.000000e+00> : vector<8x32xf32>
    %96 = tpu.matmul %95, %83, %cst_42 {dimension_numbers = #tpu.dot_dimension_numbers<[1], [0], [0], [1], [0, 0, 1, 1], [], []>} : vector<8x8xf32>, vector<8x32xf32>, vector<8x32xf32> -> vector<8x32xf32>
    %97 = vector.extract_strided_slice %32 {offsets = [0, 96], sizes = [8, 32], strides = [1, 1]} : vector<8x128xf32> to vector<8x32xf32>
    %cst_43 = arith.constant 0.176776692 : f32
    %98 = vector.broadcast %cst_43 : f32 to vector<8x32xf32>
    %99 = arith.mulf %97, %98 : vector<8x32xf32>
    %100 = vector.extract_strided_slice %37 {offsets = [0, 96], sizes = [8, 32], strides = [1, 1]} : vector<8x128xf32> to vector<8x32xf32>
    %101 = vector.extract_strided_slice %42 {offsets = [0, 96], sizes = [8, 32], strides = [1, 1]} : vector<8x128xf32> to vector<8x32xf32>
    "tpu.trace_start"() <{level = 10 : i32, message = "qd,kd->qk"}> : () -> ()
    %cst_44 = arith.constant dense<0.000000e+00> : vector<8x8xf32>
    %102 = tpu.matmul %99, %100, %cst_44 {dimension_numbers = #tpu.dot_dimension_numbers<[1], [1], [0], [0], [0, 0, 1, 0], [], []>} : vector<8x32xf32>, vector<8x32xf32>, vector<8x8xf32> -> vector<8x8xf32>
    "tpu.trace_stop"() : () -> ()
    %103 = vector.broadcast %3 : vector<1x8xf32> to vector<8x8xf32>
    %104 = arith.addf %102, %103 : vector<8x8xf32>
    %cst_45 = arith.constant dense<0xFF800000> : vector<8xf32>
    %105 = vector.multi_reduction <maximumf>, %104, %cst_45 [1] : vector<8x8xf32> to vector<8xf32>
    %106 = vector.shape_cast %105 : vector<8xf32> to vector<8x1xf32>
    %107 = vector.broadcast %106 : vector<8x1xf32> to vector<8x8xf32>
    %108 = arith.subf %104, %107 : vector<8x8xf32>
    %109 = math.exp %108 : vector<8x8xf32>
    %cst_46 = arith.constant dense<0.000000e+00> : vector<8xf32>
    %110 = vector.multi_reduction <add>, %109, %cst_46 [1] : vector<8x8xf32> to vector<8xf32>
    %111 = vector.shape_cast %110 : vector<8xf32> to vector<8x1xf32>
    %112 = vector.broadcast %111 : vector<8x1xf32> to vector<8x8xf32>
    %113 = arith.divf %109, %112 : vector<8x8xf32>
    %cst_47 = arith.constant dense<0.000000e+00> : vector<8x32xf32>
    %114 = tpu.matmul %113, %101, %cst_47 {dimension_numbers = #tpu.dot_dimension_numbers<[1], [0], [0], [1], [0, 0, 1, 1], [], []>} : vector<8x8xf32>, vector<8x32xf32>, vector<8x32xf32> -> vector<8x32xf32>
    %115 = tpu.concatenate %60, %78, %96, %114 in 1 : vector<8x32xf32>, vector<8x32xf32>, vector<8x32xf32>, vector<8x32xf32> -> vector<8x128xf32>
    %c0_48 = arith.constant 0 : index
    %c0_49 = arith.constant 0 : index
    %116 = vector.load %arg11[%c0_48, %c0_49] : memref<128x128xf32, #tpu.memory_space<vmem>>, vector<128x128xf32>
    %cst_50 = arith.constant dense<0.000000e+00> : vector<8x128xf32>
    %117 = tpu.matmul %115, %116, %cst_50 {dimension_numbers = #tpu.dot_dimension_numbers<[1], [0], [0], [1], [0, 0, 1, 1], [], []>} : vector<8x128xf32>, vector<128x128xf32>, vector<8x128xf32> -> vector<8x128xf32>
    %c0_51 = arith.constant 0 : index
    %c0_52 = arith.constant 0 : index
    %118 = vector.load %arg12[%c0_51, %c0_52] : memref<1x128xf32, #tpu.memory_space<vmem>>, vector<1x128xf32>
    %119 = vector.broadcast %118 : vector<1x128xf32> to vector<8x128xf32>
    %120 = arith.addf %117, %119 : vector<8x128xf32>
    %121 = arith.addf %120, %1 : vector<8x128xf32>
    %c0_53 = arith.constant 0 : index
    %c0_54 = arith.constant 0 : index
    %122 = vector.load %arg13[%c0_53, %c0_54] : memref<1x128xf32, #tpu.memory_space<vmem>>, vector<1x128xf32>
    %c0_55 = arith.constant 0 : index
    %c0_56 = arith.constant 0 : index
    %123 = vector.load %arg14[%c0_55, %c0_56] : memref<1x128xf32, #tpu.memory_space<vmem>>, vector<1x128xf32>
    %cst_57 = arith.constant dense<0.000000e+00> : vector<8xf32>
    %124 = vector.multi_reduction <add>, %121, %cst_57 [1] : vector<8x128xf32> to vector<8xf32>
    %125 = vector.shape_cast %124 : vector<8xf32> to vector<8x1xf32>
    %cst_58 = arith.constant 1.280000e+02 : f32
    %126 = vector.broadcast %cst_58 : f32 to vector<8x1xf32>
    %127 = arith.divf %125, %126 : vector<8x1xf32>
    %128 = vector.broadcast %127 : vector<8x1xf32> to vector<8x128xf32>
    %129 = arith.subf %121, %128 : vector<8x128xf32>
    %130 = arith.mulf %129, %129 : vector<8x128xf32>
    %cst_59 = arith.constant dense<0.000000e+00> : vector<8xf32>
    %131 = vector.multi_reduction <add>, %130, %cst_59 [1] : vector<8x128xf32> to vector<8xf32>
    %132 = vector.shape_cast %131 : vector<8xf32> to vector<8x1xf32>
    %cst_60 = arith.constant 1.280000e+02 : f32
    %133 = vector.broadcast %cst_60 : f32 to vector<8x1xf32>
    %134 = arith.divf %132, %133 : vector<8x1xf32>
    %135 = vector.broadcast %127 : vector<8x1xf32> to vector<8x128xf32>
    %136 = arith.subf %121, %135 : vector<8x128xf32>
    %cst_61 = arith.constant 9.99999997E-7 : f32
    %137 = vector.broadcast %cst_61 : f32 to vector<8x1xf32>
    %138 = arith.addf %134, %137 : vector<8x1xf32>
    %139 = math.rsqrt %138 : vector<8x1xf32>
    %140 = vector.broadcast %139 : vector<8x1xf32> to vector<8x128xf32>
    %141 = arith.mulf %136, %140 : vector<8x128xf32>
    %142 = vector.broadcast %122 : vector<1x128xf32> to vector<8x128xf32>
    %143 = arith.mulf %141, %142 : vector<8x128xf32>
    %144 = vector.broadcast %123 : vector<1x128xf32> to vector<8x128xf32>
    %145 = arith.addf %143, %144 : vector<8x128xf32>
    %c0_62 = arith.constant 0 : index
    %c0_63 = arith.constant 0 : index
    %146 = vector.load %arg15[%c0_62, %c0_63] : memref<128x256xf32, #tpu.memory_space<vmem>>, vector<128x256xf32>
    %cst_64 = arith.constant dense<0.000000e+00> : vector<8x256xf32>
    %147 = tpu.matmul %145, %146, %cst_64 {dimension_numbers = #tpu.dot_dimension_numbers<[1], [0], [0], [1], [0, 0, 1, 1], [], []>} : vector<8x128xf32>, vector<128x256xf32>, vector<8x256xf32> -> vector<8x256xf32>
    %c0_65 = arith.constant 0 : index
    %c0_66 = arith.constant 0 : index
    %148 = vector.load %arg16[%c0_65, %c0_66] : memref<1x256xf32, #tpu.memory_space<vmem>>, vector<1x256xf32>
    %149 = vector.broadcast %148 : vector<1x256xf32> to vector<8x256xf32>
    %150 = arith.addf %147, %149 : vector<8x256xf32>
    %cst_67 = arith.constant 5.000000e-01 : f32
    %151 = vector.broadcast %cst_67 : f32 to vector<8x256xf32>
    %152 = arith.mulf %151, %150 : vector<8x256xf32>
    %cst_68 = arith.constant 4.471500e-02 : f32
    %153 = vector.broadcast %cst_68 : f32 to vector<8x256xf32>
    %154 = arith.mulf %153, %150 : vector<8x256xf32>
    %155 = arith.mulf %154, %150 : vector<8x256xf32>
    %156 = arith.mulf %155, %150 : vector<8x256xf32>
    %157 = arith.addf %150, %156 : vector<8x256xf32>
    %cst_69 = arith.constant 0.797884583 : f32
    %158 = vector.broadcast %cst_69 : f32 to vector<8x256xf32>
    %159 = arith.mulf %158, %157 : vector<8x256xf32>
    %160 = math.tanh %159 : vector<8x256xf32>
    %cst_70 = arith.constant 1.000000e+00 : f32
    %161 = vector.broadcast %cst_70 : f32 to vector<8x256xf32>
    %162 = arith.addf %161, %160 : vector<8x256xf32>
    %163 = arith.mulf %152, %162 : vector<8x256xf32>
    %c0_71 = arith.constant 0 : index
    %c0_72 = arith.constant 0 : index
    %164 = vector.load %arg17[%c0_71, %c0_72] : memref<256x128xf32, #tpu.memory_space<vmem>>, vector<256x128xf32>
    %cst_73 = arith.constant dense<0.000000e+00> : vector<8x128xf32>
    %165 = tpu.matmul %163, %164, %cst_73 {dimension_numbers = #tpu.dot_dimension_numbers<[1], [0], [0], [1], [0, 0, 1, 1], [], []>} : vector<8x256xf32>, vector<256x128xf32>, vector<8x128xf32> -> vector<8x128xf32>
    %c0_74 = arith.constant 0 : index
    %c0_75 = arith.constant 0 : index
    %166 = vector.load %arg18[%c0_74, %c0_75] : memref<1x128xf32, #tpu.memory_space<vmem>>, vector<1x128xf32>
    %167 = vector.broadcast %166 : vector<1x128xf32> to vector<8x128xf32>
    %168 = arith.addf %165, %167 : vector<8x128xf32>
    %169 = arith.addf %168, %121 : vector<8x128xf32>
    %c0_76 = arith.constant 0 : index
    %c0_77 = arith.constant 0 : index
    %c0_78 = arith.constant 0 : index
    %170 = vector.load %arg19[%c0_76, %c0_77, %c0_78] : memref<1x8x128xf32, #tpu.memory_space<vmem>>, vector<1x8x128xf32>
    %171 = vector.shape_cast %170 : vector<1x8x128xf32> to vector<8x128xf32>
    %172 = vector.shape_cast %169 : vector<8x128xf32> to vector<1x8x128xf32>
    tpu.vector_store %arg19[%c0_76, %c0_77, %c0_78], %172 {strides = array<i32>} : memref<1x8x128xf32, #tpu.memory_space<vmem>>, vector<1x8x128xf32>,
    return
  }
  func.func @transform_0(%arg0: i32) -> (i32, i32, i32) {
    %c0_i32 = arith.constant 0 : i32
    %c0_i32_0 = arith.constant 0 : i32
    %c0_i32_1 = arith.constant 0 : i32
    return %arg0, %c0_i32, %c0_i32_0 : i32, i32, i32
  }
  func.func @transform_1(%arg0: i32) -> (i32, i32, i32) {
    %c0_i32 = arith.constant 0 : i32
    %c0_i32_0 = arith.constant 0 : i32
    %c0_i32_1 = arith.constant 0 : i32
    return %arg0, %c0_i32, %c0_i32_0 : i32, i32, i32
  }
  func.func @transform_2(%arg0: i32) -> (i32, i32) {
    %c0_i32 = arith.constant 0 : i32
    %c0_i32_0 = arith.constant 0 : i32
    %c0_i32_1 = arith.constant 0 : i32
    return %c0_i32, %c0_i32_0 : i32, i32
  }
  func.func @transform_3(%arg0: i32) -> (i32, i32) {
    %c0_i32 = arith.constant 0 : i32
    %c0_i32_0 = arith.constant 0 : i32
    %c0_i32_1 = arith.constant 0 : i32
    return %c0_i32, %c0_i32_0 : i32, i32
  }
  func.func @transform_4(%arg0: i32) -> (i32, i32) {
    %c0_i32 = arith.constant 0 : i32
    %c0_i32_0 = arith.constant 0 : i32
    %c0_i32_1 = arith.constant 0 : i32
    return %c0_i32, %c0_i32_0 : i32, i32
  }
  func.func @transform_5(%arg0: i32) -> (i32, i32) {
    %c0_i32 = arith.constant 0 : i32
    %c0_i32_0 = arith.constant 0 : i32
    %c0_i32_1 = arith.constant 0 : i32
    return %c0_i32, %c0_i32_0 : i32, i32
  }
  func.func @transform_6(%arg0: i32) -> (i32, i32) {
    %c0_i32 = arith.constant 0 : i32
    %c0_i32_0 = arith.constant 0 : i32
    %c0_i32_1 = arith.constant 0 : i32
    return %c0_i32, %c0_i32_0 : i32, i32
  }
  func.func @transform_7(%arg0: i32) -> (i32, i32) {
    %c0_i32 = arith.constant 0 : i32
    %c0_i32_0 = arith.constant 0 : i32
    %c0_i32_1 = arith.constant 0 : i32
    return %c0_i32, %c0_i32_0 : i32, i32
  }
  func.func @transform_8(%arg0: i32) -> (i32, i32) {
    %c0_i32 = arith.constant 0 : i32
    %c0_i32_0 = arith.constant 0 : i32
    %c0_i32_1 = arith.constant 0 : i32
    return %c0_i32, %c0_i32_0 : i32, i32
  }
  func.func @transform_9(%arg0: i32) -> (i32, i32) {
    %c0_i32 = arith.constant 0 : i32
    %c0_i32_0 = arith.constant 0 : i32
    %c0_i32_1 = arith.constant 0 : i32
    return %c0_i32, %c0_i32_0 : i32, i32
  }
  func.func @transform_10(%arg0: i32) -> (i32, i32) {
    %c0_i32 = arith.constant 0 : i32
    %c0_i32_0 = arith.constant 0 : i32
    %c0_i32_1 = arith.constant 0 : i32
    return %c0_i32, %c0_i32_0 : i32, i32
  }
  func.func @transform_11(%arg0: i32) -> (i32, i32) {
    %c0_i32 = arith.constant 0 : i32
    %c0_i32_0 = arith.constant 0 : i32
    %c0_i32_1 = arith.constant 0 : i32
    return %c0_i32, %c0_i32_0 : i32, i32
  }
  func.func @transform_12(%arg0: i32) -> (i32, i32) {
    %c0_i32 = arith.constant 0 : i32
    %c0_i32_0 = arith.constant 0 : i32
    %c0_i32_1 = arith.constant 0 : i32
    return %c0_i32, %c0_i32_0 : i32, i32
  }
  func.func @transform_13(%arg0: i32) -> (i32, i32) {
    %c0_i32 = arith.constant 0 : i32
    %c0_i32_0 = arith.constant 0 : i32
    %c0_i32_1 = arith.constant 0 : i32
    return %c0_i32, %c0_i32_0 : i32, i32
  }
  func.func @transform_14(%arg0: i32) -> (i32, i32) {
    %c0_i32 = arith.constant 0 : i32
    %c0_i32_0 = arith.constant 0 : i32
    %c0_i32_1 = arith.constant 0 : i32
    return %c0_i32, %c0_i32_0 : i32, i32
  }
  func.func @transform_15(%arg0: i32) -> (i32, i32) {
    %c0_i32 = arith.constant 0 : i32
    %c0_i32_0 = arith.constant 0 : i32
    %c0_i32_1 = arith.constant 0 : i32
    return %c0_i32, %c0_i32_0 : i32, i32
  }
  func.func @transform_16(%arg0: i32) -> (i32, i32) {
    %c0_i32 = arith.constant 0 : i32
    %c0_i32_0 = arith.constant 0 : i32
    %c0_i32_1 = arith.constant 0 : i32
    return %c0_i32, %c0_i32_0 : i32, i32
  }
  func.func @transform_17(%arg0: i32) -> (i32, i32) {
    %c0_i32 = arith.constant 0 : i32
    %c0_i32_0 = arith.constant 0 : i32
    %c0_i32_1 = arith.constant 0 : i32
    return %c0_i32, %c0_i32_0 : i32, i32
  }
  func.func @transform_18(%arg0: i32) -> (i32, i32, i32) {
    %c0_i32 = arith.constant 0 : i32
    %c0_i32_0 = arith.constant 0 : i32
    %c0_i32_1 = arith.constant 0 : i32
    return %arg0, %c0_i32, %c0_i32_0 : i32, i32, i32
  }
}

</mosaic_0001>

<bundles_post_ra>
// kernel: tpu_custom_call.1
= control target key start
LH: loop header
LB: loop body
LE: loop exit
PB: predicated region body
PF: predicated region fallthrough
CT: control target
= control target key end

     0   :  { %s3749_s0 = inlined_call_operand.hbm [shape: f32[2,8,128], index: 0, kind: input, shape index: {}]   ;;  %s3750_s1 = inlined_call_operand.vmem [shape: f32[2,1,8], index: 1, kind: input, shape index: {}]   ;;  %s3751_s2 = inlined_call_operand.vmem [shape: f32[1,128], index: 2, kind: input, shape index: {}]   ;;  %s3752_s3 = inlined_call_operand.vmem [shape: f32[1,128], index: 3, kind: input, shape index: {}]   ;;  %s3753_s4 = inlined_call_operand.hbm [shape: f32[128,128], index: 4, kind: input, shape index: {}]   ;;  %s3754_s5 = inlined_call_operand.vmem [shape: f32[1,128], index: 5, kind: input, shape index: {}]   ;;  %s3755_s6 = inlined_call_operand.hbm [shape: f32[128,128], index: 6, kind: input, shape index: {}]   ;;  %s3756_s7 = inlined_call_operand.vmem [shape: f32[1,128], index: 7, kind: input, shape index: {}]   ;;  %s3757_s8 = inlined_call_operand.hbm [shape: f32[128,128], index: 8, kind: input, shape index: {}]   ;;  %s3758_s9 = inlined_call_operand.vmem [shape: f32[1,128], index: 9, kind: input, shape index: {}]   ;;  %s3759_s10 = inlined_call_operand.hbm [shape: f32[128,128], index: 10, kind: input, shape index: {}]   ;;  %s3760_s11 = inlined_call_operand.vmem [shape: f32[1,128], index: 11, kind: input, shape index: {}]   ;;  %s3761_s12 = inlined_call_operand.vmem [shape: f32[1,128], index: 12, kind: input, shape index: {}]   ;;  %s3762_s13 = inlined_call_operand.vmem [shape: f32[1,128], index: 13, kind: input, shape index: {}]   ;;  %s3763_s14 = inlined_call_operand.hbm [shape: f32[128,256], index: 14, kind: input, shape index: {}]   ;;  %s3764_s15 = inlined_call_operand.vmem [shape: f32[1,256], index: 15, kind: input, shape index: {}]   ;;  %s3765_s16 = inlined_call_operand.hbm [shape: f32[256,128], index: 16, kind: input, shape index: {}]   ;;  %s3766_s17 = inlined_call_operand.vmem [shape: f32[1,128], index: 17, kind: input, shape index: {}]   ;;  %s3767_s18 = inlined_call_operand.hbm [shape: f32[2,8,128], index: 18, kind: output, shape index: {}]  }
   0x1   :  { %3777 = sst [smem:[#allocation20_spill]] %s3749_s0 }
   0x2   :  { %3778 = sst [smem:[#allocation21_spill]] %s3750_s1 }
   0x3   :  { %3779 = sst [smem:[#allocation22_spill]] %s3751_s2 }
   0x4   :  { %3780 = sst [smem:[#allocation23_spill]] %s3753_s4 }
   0x5   :  { %3781 = sst [smem:[#allocation24_spill]] %s3757_s8 }
   0x6   :  { %3782 = sst [smem:[#allocation25_spill]] %s3758_s9 }
   0x7   :  { %3783 = sst [smem:[#allocation26_spill]] %s3760_s11 }
   0x8   :  { %3784 = sst [smem:[#allocation27_spill]] %s3761_s12 }
   0x9   :  { %3785 = sst [smem:[#allocation28_spill]] %s3762_s13 }
   0xa   :  { %3786 = sst [smem:[#allocation29_spill]] %s3764_s15 }
   0xb   :  { %3787 = sst [smem:[#allocation30_spill]] %s3766_s17 }
   0xc   :  { %3788 = sst [smem:[#allocation31_spill]] %s3767_s18 }
   0xd   :  { %23 = vsyncpa [#allocation3], 0 }
   0xe   :  { %25 = vsyncpa [#allocation3 + $0x1], 0 }
   0xf   :  { %26 = vsyncpa [#allocation6], 0 }
  0x10   :  { %27 = vsyncpa [#allocation9], 0 }
  0x11   :  { %28 = vsyncpa [#allocation12], 0 }
  0x12   :  { %29 = vsyncpa [#allocation4], 0 }
  0x13   :  { %31 = vsyncpa [#allocation4 + $0x1], 0  ;;  %s3235_s27 = smov 0   ;;  %s3237_s28 = smov 0  }
  0x14   :  { %s3239_s29 = smov 0   ;;  %s3241_s30 = smov 0  }
  0x15 LB: > { %s3122_s0 = smov [#allocation5]   ;;  %s3256_s1 = sadd.s32 4294967295, %s3120_s30   ;;  %s3120_s30 = sphi %s3241_s30, %s3825_s30   ;;  %s3116_s29 = sphi %s3239_s29, %s3824_s29   ;;  %s3112_s28 = sphi %s3237_s28, %s3823_s28   ;;  %s3108_s27 = sphi %s3235_s27, %s3822_s27  }
  0x16   : > { %s474_s19 = sshll.u32 %s3122_s0, 4  ;;  %p2199_p0 = scmp.ge.s32.totalorder %s3120_s30, 1  ;;  %s3261_s19 = int_to_ptr.vmem [resolvable:$true] %s474_s19 }
  0x17   : > { %p3774_p1 = scmp.eq.s32.totalorder %s3256_s1, 0  ;;  %p456_p2 = scmp.lt.s32.totalorder %s3120_s30, 3 }
  0x18   : > { %s3123_s21 = smov [#allocation8]   ;;  %s3124_s23 = smov [#allocation11]  }
  0x19   : > { %p3263_p3 = pnand %p2199_p0, %p456_p2  ;;  %s506_s22 = sshll.u32 %s3123_s21, 4  ;;  %s3276_s22 = int_to_ptr.vmem [resolvable:$true] %s506_s22 }
  0x1a   : > { %s544_s24 = sshll.u32 %s3124_s23, 4  ;;  %s3791_s4 = sld [smem:[#allocation23_spill]]  ;;  %s3278_s24 = int_to_ptr.vmem [resolvable:$true] %s544_s24 }
  0x1b   : > { %s3789_s20 = scalar_select %p3263_p3, 1, 0 }
  0x1c   : > { %p2731_p5 = pneg %p3263_p3 }
  0x1e   : > { %p3272_p6 = pnand %p2731_p5, %p3774_p1 }
  0x20   : > { %s2844_s0 = scalar_lea.hbm %s3791_s4, 2048  ;;  %p3288_p8 = pneg %p3272_p6 }
  0x21   : > { %p2845_p7 = scmp.ne.s32.totalorder %s3791_s4, %s2844_s0  ;;  %p2851_p11 = scmp.lt.u32.totalorder %s2844_s0, %s3791_s4 }
  0x23   : > { %p2847_p9 = pnand %p3288_p8, %p2845_p7 }
  0x25   : > { %p2848_p10 = pneg %p2847_p9 }
  0x27   : > { %p2853_p12 = pnand %p2851_p11, %p2848_p10 }
  0x29   : > { %2856 = shalt.err (!%p2853_p12)
}
  0x2a   : > { %s2857_s17 = scalar_lea.vmem %s3261_s19, 2048  ;;  %p2865_p5 = scmp.lt.s32.totalorder %s3261_s19, %s3261_s19 }
  0x2b   : > { %p2858_p13 = scmp.ne.s32.totalorder %s3261_s19, %s2857_s17  ;;  %p2866_p4 = scmp.lt.s32.totalorder %s2857_s17, %s2857_s17 }
  0x2d   : > { %p2860_p0 = pnand %p2858_p13, %p3288_p8  ;;  %p2867_p7 = por %p2866_p4, %p2865_p5 }
  0x2f   : > { %p2861_p2 = pneg %p2860_p0 }
  0x31   : > { %p2868_p9 = pnand %p2867_p7, %p2861_p2 }
  0x33   : > { %2871 = shalt.err (!%p2868_p9)
}
  0x34   : > { %s3770_s18 = smov 128   ;;  %s3772_s15 = smov 8  }
  0x35   : > { %2734 = dma.hbm_to_vmem [thread:$0]  (!%p3272_p6), %s3791_s4, 2048, %s3261_s19, [#allocation6], %s3770_s18, %s3770_s18, %s3772_s15  }
  0x36   : > { %s3793_s8 = sld [smem:[#allocation24_spill]] }
  0x3c   : > { %s2872_s17 = scalar_lea.hbm %s3793_s8, 2048 }
  0x3d   : > { %p2873_p4 = scmp.ne.s32.totalorder %s3793_s8, %s2872_s17  ;;  %p2879_p12 = scmp.lt.u32.totalorder %s2872_s17, %s3793_s8 }
  0x3f   : > { %p2875_p10 = pnand %p2873_p4, %p3288_p8 }
  0x41   : > { %p2876_p11 = pneg %p2875_p10 }
  0x43   : > { %p2881_p13 = pnand %p2879_p12, %p2876_p11 }
  0x45   : > { %2884 = shalt.err (!%p2881_p13)
}
  0x46   : > { %s2885_s19 = scalar_lea.vmem %s3276_s22, 2048  ;;  %p2893_p7 = scmp.lt.s32.totalorder %s3276_s22, %s3276_s22 }
  0x47   : > { %p2886_p0 = scmp.ne.s32.totalorder %s3276_s22, %s2885_s19  ;;  %p2894_p9 = scmp.lt.s32.totalorder %s2885_s19, %s2885_s19 }
  0x49   : > { %p2888_p2 = pnand %p2886_p0, %p3288_p8  ;;  %p2895_p4 = por %p2894_p9, %p2893_p7 }
  0x4b   : > { %p2889_p5 = pneg %p2888_p2 }
  0x4d   : > { %p2896_p10 = pnand %p2895_p4, %p2889_p5 }
  0x4f   : > { %2899 = shalt.err (!%p2896_p10)
}
  0x50   : > { %2740 = dma.hbm_to_vmem [thread:$0]  (!%p3272_p6), %s3793_s8, 2048, %s3276_s22, [#allocation9], %s3770_s18, %s3770_s18, %s3772_s15  }
  0x51   : > { %s2900_s25 = scalar_lea.hbm %s3763_s14, 4096 }
  0x52   : > { %p2901_p11 = scmp.ne.s32.totalorder %s3763_s14, %s2900_s25  ;;  %p2907_p0 = scmp.lt.u32.totalorder %s2900_s25, %s3763_s14 }
  0x54   : > { %p2903_p12 = pnand %p2901_p11, %p3288_p8 }
  0x56   : > { %p2904_p13 = pneg %p2903_p12 }
  0x58   : > { %p2909_p2 = pnand %p2907_p0, %p2904_p13 }
  0x5a   : > { %2912 = shalt.err (!%p2909_p2)
}
  0x5b   : > { %s2913_s22 = scalar_lea.vmem %s3278_s24, 4096  ;;  %p2921_p4 = scmp.lt.s32.totalorder %s3278_s24, %s3278_s24 }
  0x5c   : > { %p2914_p5 = scmp.ne.s32.totalorder %s3278_s24, %s2913_s22  ;;  %p2922_p10 = scmp.lt.s32.totalorder %s2913_s22, %s2913_s22 }
  0x5e   : > { %p2916_p7 = pnand %p2914_p5, %p3288_p8  ;;  %p2923_p11 = por %p2922_p10, %p2921_p4 }
  0x60   : > { %p2917_p9 = pneg %p2916_p7 }
  0x62   : > { %p2924_p12 = pnand %p2923_p11, %p2917_p9 }
  0x64   : > { %2927 = shalt.err (!%p2924_p12)
}
  0x65   : > { %s3127_s19 = smov 256   ;;  %s3128_s9 = smov 16  }
  0x66   : > { %2746 = dma.hbm_to_vmem [thread:$0]  (!%p3272_p6), %s3763_s14, 4096, %s3278_s24, [#allocation12], %s3127_s19, %s3127_s19, %s3128_s9  }
  0x67   : > { %s3129_s13 = smov [#allocation7]   ;;  %s3130_s26 = smov [#allocation10]  }
  0x68   : > { %s490_s25 = sshll.u32 %s3129_s13, 4  ;;  %s522_s0 = sshll.u32 %s3130_s26, 4  ;;  %s491_s25 = int_to_ptr.vmem [resolvable:$true] %s490_s25  ;;  %s523_s0 = int_to_ptr.vmem [resolvable:$true] %s522_s0 }
  0x69   : > { %s2928_s22 = scalar_lea.hbm %s3755_s6, 2048 }
  0x6a   : > { %p2929_p13 = scmp.ne.s32.totalorder %s3755_s6, %s2928_s22  ;;  %p2935_p5 = scmp.lt.u32.totalorder %s2928_s22, %s3755_s6 }
  0x6c   : > { %p2931_p0 = pnand %p2929_p13, %p3288_p8 }
  0x6e   : > { %p2932_p2 = pneg %p2931_p0 }
  0x70   : > { %p2937_p7 = pnand %p2935_p5, %p2932_p2 }
  0x72   : > { %2940 = shalt.err (!%p2937_p7)
}
  0x73   : > { %s2941_s24 = scalar_lea.vmem %s491_s25, 2048  ;;  %p2949_p11 = scmp.lt.s32.totalorder %s491_s25, %s491_s25 }
  0x74   : > { %p2942_p9 = scmp.ne.s32.totalorder %s491_s25, %s2941_s24  ;;  %p2950_p12 = scmp.lt.s32.totalorder %s2941_s24, %s2941_s24 }
  0x76   : > { %p2944_p4 = pnand %p2942_p9, %p3288_p8  ;;  %p2951_p1 = por %p2950_p12, %p2949_p11 }
  0x78   : > { %p2945_p10 = pneg %p2944_p4 }
  0x7a   : > { %p2952_p3 = pnand %p2951_p1, %p2945_p10 }
  0x7c   : > { %2955 = shalt.err (!%p2952_p3)
}
  0x7d   : > { %s3794_s18 = smov 8   ;;  %s3795_s15 = smov 128  }
  0x7e   : > { %2737 = dma.hbm_to_vmem [thread:$0]  (!%p3272_p6), %s3755_s6, 2048, %s491_s25, [#allocation6], %s3795_s15, %s3795_s15, %s3794_s18  }
  0x7f   : > { %s2956_s11 = scalar_lea.hbm %s3759_s10, 2048 }
  0x80   : > { %p2957_p1 = scmp.ne.s32.totalorder %s3759_s10, %s2956_s11  ;;  %p2963_p0 = scmp.lt.u32.totalorder %s2956_s11, %s3759_s10 }
  0x82   : > { %p2959_p3 = pnand %p2957_p1, %p3288_p8 }
  0x84   : > { %p2960_p13 = pneg %p2959_p3 }
  0x86   : > { %p2965_p2 = pnand %p2963_p0, %p2960_p13 }
  0x88   : > { %2968 = shalt.err (!%p2965_p2)
}
  0x89   : > { %s2969_s17 = scalar_lea.vmem %s523_s0, 2048  ;;  %p2977_p4 = scmp.lt.s32.totalorder %s523_s0, %s523_s0 }
  0x8a   : > { %p2970_p5 = scmp.ne.s32.totalorder %s523_s0, %s2969_s17  ;;  %p2978_p10 = scmp.lt.s32.totalorder %s2969_s17, %s2969_s17 }
  0x8c   : > { %p2972_p7 = pnand %p2970_p5, %p3288_p8  ;;  %p2979_p11 = por %p2978_p10, %p2977_p4 }
  0x8e   : > { %p2973_p9 = pneg %p2972_p7 }
  0x90   : > { %p2980_p12 = pnand %p2979_p11, %p2973_p9 }
  0x92   : > { %2983 = shalt.err (!%p2980_p12)
}
  0x93   : > { %2743 = dma.hbm_to_vmem [thread:$0]  (!%p3272_p6), %s3759_s10, 2048, %s523_s0, [#allocation9], %s3795_s15, %s3795_s15, %s3794_s18  }
  0x94   : > { %s3131_s24 = smov [#allocation13]   ;;  %s2984_s9 = scalar_lea.hbm %s3765_s16, 4096 }
  0x95   : > { %s560_s4 = sshll.u32 %s3131_s24, 4  ;;  %p2985_p1 = scmp.ne.s32.totalorder %s3765_s16, %s2984_s9  ;;  %s561_s4 = int_to_ptr.vmem [resolvable:$true] %s560_s4 }
  0x96   : > { %p2991_p0 = scmp.lt.u32.totalorder %s2984_s9, %s3765_s16 }
  0x97   : > { %p2987_p3 = pnand %p2985_p1, %p3288_p8 }
  0x99   : > { %p2988_p13 = pneg %p2987_p3 }
  0x9b   : > { %p2993_p2 = pnand %p2991_p0, %p2988_p13 }
  0x9d   : > { %2996 = shalt.err (!%p2993_p2)
}
  0x9e   : > { %s2997_s0 = scalar_lea.vmem %s561_s4, 4096  ;;  %p3005_p4 = scmp.lt.s32.totalorder %s561_s4, %s561_s4 }
  0x9f   : > { %p2998_p5 = scmp.ne.s32.totalorder %s561_s4, %s2997_s0  ;;  %p3006_p10 = scmp.lt.s32.totalorder %s2997_s0, %s2997_s0 }
  0xa1   : > { %p3000_p7 = pnand %p2998_p5, %p3288_p8  ;;  %p3007_p11 = por %p3006_p10, %p3005_p4 }
  0xa3   : > { %p3001_p9 = pneg %p3000_p7 }
  0xa5   : > { %p3008_p12 = pnand %p3007_p11, %p3001_p9 }
  0xa7   : > { %3011 = shalt.err (!%p3008_p12)
}
  0xa8   : > { %2749 = dma.hbm_to_vmem [thread:$0]  (!%p3272_p6), %s3765_s16, 4096, %s561_s4, [#allocation12], %s3795_s15, %s3795_s15, %s3794_s18  }
  0xa9   : > { %s2198_s2 = sadd.s32 4294967294, %s3120_s30   ;;  %s3426_s21 = sadd.s32 1, %s3120_s30  }
  0xaa   : > { %s41_s25 = ssub.s32 %s3120_s30, %s3426_s21  ;;  %s44_s22 = sadd.s32 1, %s3116_s29 }
  0xab   : > { %p42_p8 = scmp.eq.s32.totalorder %s41_s25, 0  ;;  %p51_p1 = scmp.ne.s32.totalorder %s3116_s29, %s3112_s28 }
  0xac   : > { %p52_p3 = scmp.eq.s32.totalorder %s3120_s30, 0  ;;  %p57_p13 = scmp.ne.s32.totalorder %s3112_s28, %s3108_s27 }
  0xad   : > { %s3437_s24 = scalar_select %p42_p8, %s3116_s29, %s44_s22  }
  0xae   : > { %p3439_p0 = por %p52_p3, %p51_p1  ;;  %p3797_p2 = scmp.eq.s32.totalorder %s3256_s1, 0 }
  0xaf   : > { %p443_p5 = scmp.eq.s32.totalorder %s3256_s1, 1  ;;  %p449_p7 = scmp.eq.s32.totalorder %s2198_s2, 1 }
  0xb0   : > { %p3445_p6 = por %p3797_p2, %p57_p13  ;;  %p2764_p9 = scmp.lt.s32.totalorder %s3120_s30, 2 }
  0xb1   : > { %s577_s15 = sand.u32 1, %s3116_s29   ;;  %p3452_p4 = por %p443_p5, %p51_p1 }
  0xb2   : > { %p3456_p10 = por %p449_p7, %p57_p13  ;;  %s2207_s9 = sshll.u32 %s577_s15, 3 }
  0xb3   : > { %s3799_s4 = scalar_select %p3452_p4, 1, 0 }
  0xb4   : > { %s3800_s19 = scalar_select %p3456_p10, 1, 0 }
  0xb5   : > { %s2208_s11 = sshll.u32 %s3120_s30, 7  ;;  %s3801_s26 = sld [smem:[#allocation20_spill]] }
  0xb6   : > { %s581_s23 = scalar_lea.vmem [#allocation2], %s2207_s9  ;;  %p3470_p11 = pnand %p2764_p9, %p3439_p0 }
  0xb7   : > { %s588_s17 = sshll.u32 %s581_s23, 4  ;;  %s578_s25 = scalar_lea.sflag [#allocation3], %s577_s15  ;;  %s3466_s17 = int_to_ptr.vmem [resolvable:$true] %s588_s17 }
  0xb8   : > { %p3014_p8 = pneg %p3470_p11 }
  0xbb   : > { %s3464_s0 = scalar_lea.hbm %s3801_s26, %s2208_s11  ;;  %s3017_s12 = scalar_lea.hbm %s3801_s26, 256 }
  0xbc   : > { %s3012_s22 = scalar_lea.hbm %s3464_s0, 128  ;;  %p3018_p13 = scmp.lt.u32.totalorder %s3464_s0, %s3801_s26 }
  0xbd   : > { %p3013_p12 = scmp.ne.s32.totalorder %s3464_s0, %s3012_s22  ;;  %p3019_p0 = scmp.lt.u32.totalorder %s3017_s12, %s3012_s22 }
  0xbe   : > { %p3021_p5 = scmp.lt.u32.totalorder %s3012_s22, %s3464_s0 }
  0xbf   : > { %p3015_p1 = pnand %p3014_p8, %p3013_p12  ;;  %p3020_p2 = por %p3019_p0, %p3018_p13 }
  0xc1   : > { %p3016_p3 = pneg %p3015_p1  ;;  %p3022_p7 = por %p3021_p5, %p3020_p2 }
  0xc3   : > { %p3023_p9 = pnand %p3022_p7, %p3016_p3 }
  0xc5   : > { %3026 = shalt.err (!%p3023_p9)
}
  0xc6   : > { %s3027_s15 = scalar_lea.vmem %s3466_s17, 128  ;;  %s3132_s23 = smov [#allocation2]  }
  0xc7   : > { %p3028_p12 = scmp.ne.s32.totalorder %s3466_s17, %s3027_s15  ;;  %s3032_s9 = sshll.u32 %s3132_s23, 4  ;;  %s3033_s9 = int_to_ptr.vmem [resolvable:$false] %s3032_s9 }
  0xc8   : > { %s3034_s11 = scalar_lea.vmem %s3033_s9, 256  ;;  %p3035_p4 = scmp.lt.s32.totalorder %s3466_s17, %s3033_s9 }
  0xc9   : > { %p3030_p1 = pnand %p3028_p12, %p3014_p8  ;;  %p3036_p13 = scmp.lt.s32.totalorder %s3034_s11, %s3027_s15 }
  0xcb   : > { %p3031_p10 = pneg %p3030_p1  ;;  %p3037_p0 = por %p3036_p13, %p3035_p4 }
  0xcd   : > { %p3038_p2 = pnand %p3037_p0, %p3031_p10 }
  0xcf   : > { %3041 = shalt.err (!%p3038_p2)
}
  0xd0   : > { %2753 = dma.hbm_to_vmem [thread:$0]  (!%p3470_p11), %s3464_s0, 128, %s3466_s17, %s578_s25  }
  0xd1   : > { %p3803_p3 = scmp.ne.s32.totalorder %s3789_s20, 0 }
  0xd2   : > { %s3502_s22 = sand.u32 (!%p3803_p3), 1, %s3112_s28  }
  0xd3   : > { %603 = sbr.rel (%p3803_p3) target bundleno = 4210 (0x1072), region = 92  ;;  %s2210_s12 = sshll.u32 (!%p3803_p3), %s3502_s22, 3 }
  0xd4   : > { %s606_s8 = scalar_lea.sflag (!%p3803_p3), [#allocation3], %s3502_s22  ;;  %s609_s13 = scalar_lea.vmem (!%p3803_p3), [#allocation2], %s2210_s12 }
  0xda   : > { %3087 = dma.done.wait (%p3445_p6), %s606_s8, 128  }
  0xdb   : > { %3089 = vsyncadd (%p3445_p6), %s606_s8, 4294967168  ;;  %p3804_p4 = scmp.eq.s32.totalorder %s3256_s1, 0 }
  0xdd   : > { %3091 = dma.done.wait (%p3804_p4), [#allocation6], 4096   ;;  %p3805_p10 = pmov %p3804_p4 }
  0xde   : > { %p3806_p11 = pmov %p3804_p4 }
  0xdf   : > { %3093 = vsyncadd (%p3805_p10), [#allocation6], 4294963200 }
  0xe0   : > { %3095 = dma.done.wait (%p3806_p11), [#allocation9], 4096   ;;  %p3807_p8 = pmov %p3804_p4 }
  0xe1   : > { %p3808_p5 = pmov %p3804_p4 }
  0xe2   : > { %3097 = vsyncadd (%p3807_p8), [#allocation9], 4294963200 }
  0xe3   : > { %3099 = dma.done.wait (%p3808_p5), [#allocation12], 8192   ;;  %p3809_p7 = pmov %p3804_p4 }
  0xe4   : > { %v3524_v0 = vld [vmem:[%s609_s13] sm:$0xff]  ;;  %v722_v1 = vld [vmem:[#allocation5] sm:$0xff]  ;;  %v723_v2 = vld [vmem:[#allocation5 + $0x8] sm:$0xff]  ;;  %v3133_v4 = vmov 0.0|0.0   ;;  %vm3134_vm0 = vmmov 0   ;;  %v3135_v41 = vmov 0.0  }
  0xe5   : > { %3101 = vsyncadd (%p3809_p7), [#allocation12], 4294959104  ;;  %696 = vadd.xlane.f32.xlu0 %v3524_v0  ;;  %v815_v3 = vld [vmem:[#allocation7] sm:$0xff]  ;;  %2543 = vmatprep.subr.bf16.mxu0 %v3133_v4  ;;  %v2544_v5 = vpack.c.bf16 %v723_v2, %v722_v1  ;;  %v816_v6 = vld [vmem:[#allocation7 + $0x8] sm:$0xff]  ;;  %s3810_s0 = sld [smem:[#allocation22_spill]]  ;;  %vm1008_vm1 = vcmask 261120  }
  0xe6   : > { %2567 = vmatprep.subr.bf16.mxu1 %v3133_v4  ;;  %v724_v7 = vld [vmem:[#allocation5 + $0x10] sm:$0xff]  ;;  %v725_v8 = vld [vmem:[#allocation5 + $0x18] sm:$0xff]  ;;  %v2568_v9 = vpack.c.bf16 %v816_v6, %v815_v3  ;;  %v726_v14 = vld [vmem:[#allocation5 + $0x20] sm:$0xff]  ;;  %2395 = vmatprep.mubr.msk.f32.mxu0 %vm3134_vm0, %v3135_v41  ;;  %s3136_s11 = smov 96   ;;  %s3811_s20 = sld [smem:[#allocation25_spill]]  ;;  %vm1085_vm2 = vcmask 64512  }
  0xe7   : > { %v817_v10 = vld [vmem:[#allocation7 + $0x10] sm:$0xff]  ;;  %v818_v11 = vld [vmem:[#allocation7 + $0x18] sm:$0xff]  ;;  %2545 = vmatpush3.bf16.msra.mxu0 %v2544_v5  ;;  %v2547_v12 = vpack.c.bf16 %v725_v8, %v724_v7  ;;  %v727_v15 = vld [vmem:[#allocation5 + $0x28] sm:$0xff]  ;;  %2430 = vmatprep.mubr.msk.f32.mxu1 %vm3134_vm0, %v3135_v41  ;;  %p689_p6 = scmp.lt.s32.totalorder %s3256_s1, 1  ;;  %s3812_s2 = sld [smem:[#allocation21_spill]]  ;;  %vm1679_vm3 = vcmask 523264  }
  0xe8   : > { %2569 = vmatpush3.bf16.msra.mxu1 %v2568_v9  ;;  %2546 = vmatprep.subr.bf16.mxu0 %v3133_v4  ;;  %v2571_v13 = vpack.c.bf16 %v818_v11, %v817_v10  ;;  %v819_v16 = vld [vmem:[#allocation7 + $0x20] sm:$0xff]  ;;  %v820_v17 = vld [vmem:[#allocation7 + $0x28] sm:$0xff]  ;;  %v2550_v18 = vpack.c.bf16 %v727_v15, %v726_v14  ;;  %v728_v24 = vld [vmem:[#allocation5 + $0x30] sm:$0xff]  ;;  %s3137_s15 = smov 64   ;;  %s3138_s23 = smov 32   ;;  %vm1681_vm4 = vcmask 785408  }
  0xe9   : > { %2570 = vmatprep.subr.bf16.mxu1 %v3133_v4  ;;  %v2574_v19 = vpack.c.bf16 %v820_v17, %v819_v16  ;;  %v729_v25 = vld [vmem:[#allocation5 + $0x38] sm:$0xff]  ;;  %v821_v27 = vld [vmem:[#allocation7 + $0x30] sm:$0xff]  ;;  %v730_v30 = vld [vmem:[#allocation5 + $0x40] sm:$0xff]  ;;  %s690_s18 = scalar_select %p689_p6, %s3256_s1, 1 }
  0xea   : > { %v2553_v26 = vpack.c.bf16 %v729_v25, %v728_v24  ;;  %v822_v28 = vld [vmem:[#allocation7 + $0x38] sm:$0xff]  ;;  %v731_v31 = vld [vmem:[#allocation5 + $0x48] sm:$0xff]  ;;  %v823_v33 = vld [vmem:[#allocation7 + $0x40] sm:$0xff]  ;;  %s3813_s13 = sld [smem:[#allocation26_spill]]  ;;  %p3819_p12 = scmp.ne.s32.totalorder %s3799_s4, 0 }
  0xeb   : > { %2548 = vmatpush3.bf16.msra.mxu0 %v2547_v12  ;;  %v2577_v29 = vpack.c.bf16 %v822_v28, %v821_v27  ;;  %v2556_v32 = vpack.c.bf16 %v731_v31, %v730_v30  ;;  %v824_v34 = vld [vmem:[#allocation7 + $0x48] sm:$0xff]  ;;  %v732_v36 = vld [vmem:[#allocation5 + $0x50] sm:$0xff]  ;;  %v733_v37 = vld [vmem:[#allocation5 + $0x58] sm:$0xff] }
  0xec   : > { %2572 = vmatpush3.bf16.msra.mxu1 %v2571_v13  ;;  %2549 = vmatprep.subr.bf16.mxu0 %v3133_v4  ;;  %v2580_v35 = vpack.c.bf16 %v824_v34, %v823_v33  ;;  %v825_v38 = vld [vmem:[#allocation7 + $0x50] sm:$0xff]  ;;  %v2559_v39 = vpack.c.bf16 %v733_v37, %v732_v36  ;;  %v826_v40 = vld [vmem:[#allocation7 + $0x58] sm:$0xff]  ;;  %v734_v43 = vld [vmem:[#allocation5 + $0x60] sm:$0xff] }
  0xed   : > { %2573 = vmatprep.subr.bf16.mxu1 %v3133_v4  ;;  %v2583_v42 = vpack.c.bf16 %v826_v40, %v825_v38  ;;  %v735_v44 = vld [vmem:[#allocation5 + $0x68] sm:$0xff]  ;;  %v827_v45 = vld [vmem:[#allocation7 + $0x60] sm:$0xff]  ;;  %v736_v49 = vld [vmem:[#allocation5 + $0x70] sm:$0xff]  ;;  %s691_s25 = scalar_lea.vmem %s3812_s2, %s690_s18  ;;  %s3814_s18 = sld [smem:[#allocation27_spill]] }
  0xee   : > { %v828_v46 = vld [vmem:[#allocation7 + $0x68] sm:$0xff]  ;;  %v2562_v47 = vpack.c.bf16 %v735_v44, %v734_v43  ;;  %v737_v50 = vld [vmem:[#allocation5 + $0x78] sm:$0xff]  ;;  %v829_v51 = vld [vmem:[#allocation7 + $0x70] sm:$0xff]  ;;  %s3815_s2 = sld [smem:[#allocation28_spill]] }
  0xef   : > { %2551 = vmatpush3.bf16.msra.mxu0 %v2550_v18  ;;  %v2586_v48 = vpack.c.bf16 %v828_v46, %v827_v45  ;;  %v830_v52 = vld [vmem:[#allocation7 + $0x78] sm:$0xff]  ;;  %v2565_v53 = vpack.c.bf16 %v737_v50, %v736_v49  ;;  %v2218_v59 = vld [vmem:[%s3810_s0] ss:$0 sm:$0xff]  ;;  %v908_v61 = vld [vmem:[#allocation8] sm:$0xff] }
  0xf0   : > { %2575 = vmatpush3.bf16.msra.mxu1 %v2574_v19  ;;  %2552 = vmatprep.subr.bf16.mxu0 %v3133_v4  ;;  %v2589_v54 = vpack.c.bf16 %v830_v52, %v829_v51  ;;  %v909_v62 = vld [vmem:[#allocation8 + $0x8] sm:$0xff]  ;;  %v2219_v63 = vld [vmem:[%s3752_s3] ss:$0 sm:$0xff]  ;;  %v911_v6 = vld [vmem:[#allocation8 + $0x18] sm:$0xff] }
  0xf1   : > { %2576 = vmatprep.subr.bf16.mxu1 %v3133_v4  ;;  %v2592_v2 = vpack.c.bf16 %v909_v62, %v908_v61  ;;  %v910_v5 = vld [vmem:[#allocation8 + $0x10] sm:$0xff]  ;;  %v912_v8 = vld [vmem:[#allocation8 + $0x20] sm:$0xff]  ;;  %v913_v9 = vld [vmem:[#allocation8 + $0x28] sm:$0xff] }
  0xf2   : > { %v2595_v7 = vpack.c.bf16 %v911_v6, %v910_v5  ;;  %v2598_v10 = vpack.c.bf16 %v913_v9, %v912_v8  ;;  %v914_v11 = vld [vmem:[#allocation8 + $0x30] sm:$0xff]  ;;  %v915_v12 = vld [vmem:[#allocation8 + $0x38] sm:$0xff]  ;;  %v916_v14 = vld [vmem:[#allocation8 + $0x40] sm:$0xff] }
  0xf3   : > { %2554 = vmatpush3.bf16.msra.mxu0 %v2553_v26  ;;  %v2601_v13 = vpack.c.bf16 %v915_v12, %v914_v11  ;;  %v917_v15 = vld [vmem:[#allocation8 + $0x48] sm:$0xff]  ;;  %v918_v17 = vld [vmem:[#allocation8 + $0x50] sm:$0xff]  ;;  %v919_v18 = vld [vmem:[#allocation8 + $0x58] sm:$0xff] }
  0xf4   : > { %2578 = vmatpush3.bf16.msra.mxu1 %v2577_v29  ;;  %2555 = vmatprep.subr.bf16.mxu0 %v3133_v4  ;;  %v2604_v16 = vpack.c.bf16 %v917_v15, %v916_v14  ;;  %v2607_v19 = vpack.c.bf16 %v919_v18, %v918_v17  ;;  %v923_v24 = vld [vmem:[#allocation8 + $0x78] sm:$0xff]  ;;  %v2220_v26 = vld [vmem:[%s3754_s5] ss:$0 sm:$0xff] }
  0xf5   : > { %2579 = vmatprep.subr.bf16.mxu1 %v3133_v4  ;;  %v2221_v27 = vld [vmem:[%s3756_s7] ss:$0 sm:$0xff] }
  0xf7   : > { %2557 = vmatpush3.bf16.msra.mxu0 %v2556_v32 }
  0xf8   : > { %2581 = vmatpush3.bf16.msra.mxu1 %v2580_v35  ;;  %2558 = vmatprep.subr.bf16.mxu0 %v3133_v4  ;;  %v2222_v35 = vld [vmem:[%s3811_s20] ss:$0 sm:$0xff]  ;;  %s688_s20 = scalar_lea.vmem [#allocation14], %s2210_s12 }
  0xf9   : > { %2582 = vmatprep.subr.bf16.mxu1 %v3133_v4 }
  0xfb   : > { %2560 = vmatpush3.bf16.msra.mxu0 %v2559_v39  ;;  %v3606_v39 = vld [vmem:[%s691_s25] ss:$0 sm:$0xff] }
  0xfc   : > { %2584 = vmatpush3.bf16.msra.mxu1 %v2583_v42  ;;  %2561 = vmatprep.subr.bf16.mxu0 %v3133_v4 }
  0xfd   : > { %2585 = vmatprep.subr.bf16.mxu1 %v3133_v4 }
  0xff   : > { %2563 = vmatpush3.bf16.msra.mxu0 %v2562_v47 }
 0x100   : > { %2587 = vmatpush3.bf16.msra.mxu1 %v2586_v48  ;;  %2564 = vmatprep.subr.bf16.mxu0 %v3133_v4 }
 0x101   : > { %2588 = vmatprep.subr.bf16.mxu1 %v3133_v4 }
 0x103   : > { %2566 = vmatpush3.bf16.msra.mxu0 %v2565_v53 }
 0x104   : > { %2590 = vmatpush3.bf16.msra.mxu1 %v2589_v54  ;;  %2591 = vmatprep.subr.bf16.mxu0 %v3133_v4 }
 0x105   : > { %2468 = vmatprep.subr.mxu1 %v3135_v41 }
 0x172   : > { %v697_v20 = vpop.xlane.xlu0 %696 }
 0x173   : > { %v699_v21 = vmul.f32 0.0078125, %v697_v20  ;;  %v920_v20 = vld [vmem:[#allocation8 + $0x60] sm:$0xff] }
 0x175   : > { %v3536_v22 = vsub.f32 %v3524_v0, %v699_v21  ;;  %v921_v21 = vld [vmem:[#allocation8 + $0x68] sm:$0xff] }
 0x177   : > { %v701_v23 = vmul.f32 %v3536_v22, %v3536_v22 }
 0x179   : > { %702 = vadd.xlane.f32.xlu0 %v701_v23  ;;  %v922_v23 = vld [vmem:[#allocation8 + $0x70] sm:$0xff] }
 0x17a   : > { %v2613_v25 = vpack.c.bf16 %v923_v24, %v922_v23 }
 0x206   : > { %v703_v55 = vpop.xlane.xlu0 %702 }
 0x207   : > { %v704_v56 = vmul.f32 0.0078125, %v703_v55 }
 0x209   : > { %v705_v57 = vadd.f32 1e-06, %v704_v56 }
 0x20b   : > { %2820 = vrsqrt.f32 %v705_v57 }
 0x215   : > { %v2821_v58 = vpop.eup %2820 }
 0x216   : > { %v707_v60 = vmul.f32 %v2821_v58, %v3536_v22  ;;  %v2610_v22 = vpack.c.bf16 %v921_v21, %v920_v20 }
 0x218   : > { %v714_v1 = vmul.f32 %v2218_v59, %v707_v60 }
 0x21a   : > { %v721_v3 = vadd.f32 %v2219_v63, %v714_v1 }
 0x21c   : > { %2396 = vmatmul.mubr.f32.vlgmr.msra.gmra.mrb[0].mxu0 %v721_v3  ;;  %2431 = vmatmul.mubr.f32.vlgmr.msra.gmra.mrb[0].mxu1 %v721_v3 }
 0x21d   : > { %2593 = vmatpush3.bf16.msra.mxu0 %v2592_v2  ;;  %2465 = vmatprep.mubr.msk.f32.mxu0 %vm3134_vm0, %v3135_v41 }
 0x21e   : > { %2594 = vmatprep.subr.bf16.mxu0 %v3133_v4  ;;  %2470 = vmatprep.mubr.msk.f32.mxu1 %vm3134_vm0, %v3135_v41 }
 0x221   : > { %2596 = vmatpush3.bf16.msra.mxu0 %v2595_v7 }
 0x222   : > { %2597 = vmatprep.subr.bf16.mxu0 %v3133_v4 }
 0x225   : > { %2599 = vmatpush3.bf16.msra.mxu0 %v2598_v10 }
 0x226   : > { %2600 = vmatprep.subr.bf16.mxu0 %v3133_v4 }
 0x229   : > { %2602 = vmatpush3.bf16.msra.mxu0 %v2601_v13 }
 0x22a   : > { %2603 = vmatprep.subr.bf16.mxu0 %v3133_v4 }
 0x22d   : > { %2605 = vmatpush3.bf16.msra.mxu0 %v2604_v16 }
 0x22e   : > { %2606 = vmatprep.subr.bf16.mxu0 %v3133_v4 }
 0x231   : > { %2608 = vmatpush3.bf16.msra.mxu0 %v2607_v19 }
 0x232   : > { %2609 = vmatprep.subr.bf16.mxu0 %v3133_v4 }
 0x235   : > { %2611 = vmatpush3.bf16.msra.mxu0 %v2610_v22 }
 0x236   : > { %2612 = vmatprep.subr.bf16.mxu0 %v3133_v4 }
 0x239   : > { %2614 = vmatpush3.bf16.msra.mxu0 %v2613_v25 }
 0x23a   : > { %2615 = vmatprep.subr.bf16.mxu0 %v3133_v4 }
 0x23c   : > { %2466 = vmatmul.mubr.f32.vlgmr.msra.gmra.mrb[2].mxu0 %v721_v3 }
 0x23d   : > { %2540 = vmatprep.mubr.msk.f32.mxu0 %vm3134_vm0, %v3135_v41 }
 0x2ef   : > { %v811_v28 = vpop.f32.mrb[0].mxu0  ;;  %v904_v29 = vpop.f32.mrb[0].mxu1 }
 0x2f0   : > { %v812_v30 = vadd.f32 %v2220_v26, %v811_v28  ;;  %v3581_v31 = vadd.f32 %v2221_v27, %v904_v29  ;;  %v2397_v32 = vpop.f32.mrb[1].mxu0  ;;  %v2432_v33 = vpop.f32.mrb[1].mxu1 }
 0x2f2   : > { %v3583_v34 = vmul.f32 0.17677669, %v812_v30  ;;  %1172 = vrot.lane.b32.xlu0 %v3581_v31, %s3136_s11  ;;  %2469 = vmatpush3.xpose.msk.msra.mxu1 %vm1008_vm1, %v3581_v31 }
 0x2f3   : > { %2473 = vmatprep.subr.mxu1 %v3135_v41 }
 0x2f5   : > { %2471 = vmatmul.mubr.msk.f32.vlgmr.msra.gmra.mrb[2].mxu1 %vm1008_vm1, %v3583_v34 }
 0x2f6   : > { %2475 = vmatprep.mubr.msk.f32.mxu1 %vm3134_vm0, %v3135_v41 }
 0x30f   : > { %v997_v36 = vpop.f32.mrb[2].mxu0 }
 0x310   : > { %v3597_v37 = vadd.f32 %v2222_v35, %v997_v36  ;;  %v2467_v38 = vpop.f32.mrb[3].mxu0 }
 0x312   : > { %2474 = vmatpush3.msra.mxu1 %v3597_v37 }
 0x313   : > { %2478 = vmatprep.subr.mxu1 %v3135_v41 }
 0x364   : > { %v1173_v53 = vpop.permute.xlu0 %1172 }
 0x3c8   : > { %v1081_v40 = vpop.f32.mrb[2].mxu1 }
 0x3c9   : > { %v1082_v42 = vadd.f32 %v3606_v39, %v1081_v40  ;;  %v2472_v43 = vpop.f32.mrb[3].mxu1 }
 0x3cb   : > { %v1086_v44 = vsel %vm1085_vm2, %v1082_v42, -inf }
 0x3cc   : > { %1087 = vmax.xlane.f32.xlu1 %v1086_v44  ;;  %v1684_v44 = vld [vmem:[#allocation10 + $0x8] sm:$0xff] }
 0x459   : > { %v1088_v45 = vpop.xlane.xlu1 %1087 }
 0x45a   : > { %v1089_v46 = vsub.f32 %v1082_v42, %v1088_v45  ;;  %v1685_v45 = vld [vmem:[#allocation10 + $0x10] sm:$0xff] }
 0x45c   : > { %v1090_v47 = vmul.f32 1.442695, %v1089_v46 }
 0x45e   : > { %2822 = vpow2.f32 %v1090_v47  ;;  %v1686_v47 = vld [vmem:[#allocation10 + $0x18] sm:$0xff] }
 0x468   : > { %v2823_v48 = vpop.eup %2822 }
 0x469   : > { %v1092_v49 = vsel %vm1085_vm2, %v2823_v48, 0.0 }
 0x46a   : > { %1093 = vadd.xlane.f32.xlu1 %v1092_v49  ;;  %v1687_v49 = vld [vmem:[#allocation10 + $0x20] sm:$0xff] }
 0x47b   : > { %1170 = vrot.lane.b32.xlu1 %v3583_v34, %s3136_s11 }
 0x4f7   : > { %v1094_v50 = vpop.xlane.xlu1 %1093 }
 0x4f8   : > { %2824 = vrcp.f32 %v1094_v50  ;;  %v1688_v50 = vld [vmem:[#allocation10 + $0x28] sm:$0xff] }
 0x4fb   : > { %v1171_v54 = vpop.permute.xlu1 %1170 }
 0x502   : > { %v2825_v51 = vpop.eup %2824 }
 0x503   : > { %v1096_v52 = vmul.f32 %v2825_v51, %v2823_v48  ;;  %v2619_v48 = vpack.c.bf16 %v1686_v47, %v1685_v45  ;;  %v2622_v51 = vpack.c.bf16 %v1688_v50, %v1687_v49  ;;  %v1823_v45 = vld [vmem:[#allocation11 + $0x98] sm:$0xff]  ;;  %v1820_v47 = vld [vmem:[#allocation11 + $0x80] sm:$0xff]  ;;  %v1825_v49 = vld [vmem:[#allocation11 + $0xa8] sm:$0xff] }
 0x505   : > { %2476 = vmatmul.mubr.msk.f32.vlgmr.msra.gmra.mrb[4].mxu1 %vm1085_vm2, %v1096_v52  ;;  %v1689_v52 = vld [vmem:[#allocation10 + $0x30] sm:$0xff] }
 0x506   : > { %2479 = vmatpush3.xpose.msk.msra.mxu1 %vm1008_vm1, %v1173_v53  ;;  %2480 = vmatprep.mubr.msk.f32.mxu1 %vm3134_vm0, %v3135_v41  ;;  %v1690_v53 = vld [vmem:[#allocation10 + $0x38] sm:$0xff] }
 0x507   : > { %2483 = vmatprep.subr.mxu1 %v3135_v41 }
 0x509   : > { %2481 = vmatmul.mubr.msk.f32.vlgmr.msra.gmra.mrb[6].mxu1 %vm1008_vm1, %v1171_v54  ;;  %v2625_v54 = vpack.c.bf16 %v1690_v53, %v1689_v52  ;;  %v1824_v52 = vld [vmem:[#allocation11 + $0xa0] sm:$0xff]  ;;  %v1826_v53 = vld [vmem:[#allocation11 + $0xb0] sm:$0xff] }
 0x50a   : > { %2485 = vmatprep.mubr.msk.f32.mxu1 %vm3134_vm0, %v3135_v41 }
 0x5d8   : > { %v3621_v55 = vpop.f32.mrb[4].mxu1 }
 0x5d9   : > { %v2477_v56 = vpop.f32.mrb[5].mxu1 }
 0x5da   : > { %v1692_v56 = vld [vmem:[#allocation10 + $0x48] sm:$0xff] }
 0x5dc   : > { %v1244_v57 = vpop.f32.mrb[6].mxu1 }
 0x5dd   : > { %v1245_v58 = vadd.f32 %v3606_v39, %v1244_v57  ;;  %v2482_v59 = vpop.f32.mrb[7].mxu1 }
 0x5de   : > { %v1694_v59 = vld [vmem:[#allocation10 + $0x58] sm:$0xff] }
 0x5df   : > { %v1248_v60 = vsel %vm1085_vm2, %v1245_v58, -inf }
 0x5e0   : > { %1249 = vmax.xlane.f32.xlu1 %v1248_v60 }
 0x5f1   : > { %1338 = vrot.lane.b32.xlu1 %v3581_v31, %s3137_s15 }
 0x5f5   : > { %1336 = vrot.lane.b32.xlu1 %v3583_v34, %s3137_s15 }
 0x66d   : > { %v1250_v61 = vpop.xlane.xlu1 %1249 }
 0x66e   : > { %v1251_v62 = vsub.f32 %v1245_v58, %v1250_v61  ;;  %v1693_v58 = vld [vmem:[#allocation10 + $0x50] sm:$0xff]  ;;  %v1695_v61 = vld [vmem:[#allocation10 + $0x60] sm:$0xff] }
 0x66f   : > { %v2631_v60 = vpack.c.bf16 %v1694_v59, %v1693_v58  ;;  %v1828_v59 = vld [vmem:[#allocation11 + $0xc0] sm:$0xff] }
 0x670   : > { %v1252_v63 = vmul.f32 1.442695, %v1251_v62  ;;  %v1696_v62 = vld [vmem:[#allocation10 + $0x68] sm:$0xff] }
 0x671   : > { %v1339_v7 = vpop.permute.xlu1 %1338 }
 0x672   : > { %2826 = vpow2.f32 %v1252_v63  ;;  %v2634_v63 = vpack.c.bf16 %v1696_v62, %v1695_v61  ;;  %v1833_v61 = vld [vmem:[#allocation11 + $0xe8] sm:$0xff]  ;;  %v1835_v62 = vld [vmem:[#allocation11 + $0xf8] sm:$0xff] }
 0x675   : > { %v1337_v9 = vpop.permute.xlu1 %1336 }
 0x67c   : > { %v2827_v1 = vpop.eup %2826 }
 0x67d   : > { %v1254_v2 = vsel %vm1085_vm2, %v2827_v1, 0.0 }
 0x67e   : > { %1255 = vadd.xlane.f32.xlu0 %v1254_v2  ;;  %v1698_v2 = vld [vmem:[#allocation10 + $0x78] sm:$0xff] }
 0x694   : > { %1260 = vrot.lane.b32.xlu0 %v3597_v37, %s3136_s11 }
 0x70b   : > { %v1256_v3 = vpop.xlane.xlu0 %1255 }
 0x70c   : > { %2828 = vrcp.f32 %v1256_v3 }
 0x70f   : > { %v1261_v5 = vpop.permute.xlu0 %1260 }
 0x710   : > { %2484 = vmatpush3.msra.mxu1 %v1261_v5 }
 0x711   : > { %2488 = vmatprep.subr.mxu1 %v3135_v41 }
 0x716   : > { %v2829_v6 = vpop.eup %2828 }
 0x717   : > { %v1258_v8 = vmul.f32 %v2829_v6, %v2827_v1  ;;  %v1697_v1 = vld [vmem:[#allocation10 + $0x70] sm:$0xff] }
 0x718   : > { %v2637_v3 = vpack.c.bf16 %v1698_v2, %v1697_v1  ;;  %v2667_v1 = vpack.c.bf16 %v1835_v62, %v1833_v61  ;;  %v1832_v2 = vld [vmem:[#allocation11 + $0xe0] sm:$0xff]  ;;  %v1838_v62 = vlaneseq }
 0x719   : > { %2486 = vmatmul.mubr.msk.f32.vlgmr.msra.gmra.mrb[8].mxu1 %vm1085_vm2, %v1258_v8 }
 0x71a   : > { %2489 = vmatpush3.xpose.msk.msra.mxu1 %vm1008_vm1, %v1339_v7  ;;  %2490 = vmatprep.mubr.msk.f32.mxu1 %vm3134_vm0, %v3135_v41 }
 0x71b   : > { %2493 = vmatprep.subr.mxu1 %v3135_v41 }
 0x71d   : > { %2491 = vmatmul.mubr.msk.f32.vlgmr.msra.gmra.mrb[10].mxu1 %vm1008_vm1, %v1337_v9 }
 0x71e   : > { %2495 = vmatprep.mubr.msk.f32.mxu1 %vm3134_vm0, %v3135_v41 }
 0x7ec   : > { %v1332_v10 = vpop.f32.mrb[8].mxu1 }
 0x7ed   : > { %v2487_v11 = vpop.f32.mrb[9].mxu1 }
 0x7f0   : > { %v1410_v12 = vpop.f32.mrb[10].mxu1 }
 0x7f1   : > { %v1411_v13 = vadd.f32 %v3606_v39, %v1410_v12  ;;  %v2492_v14 = vpop.f32.mrb[11].mxu1 }
 0x7f3   : > { %v1414_v15 = vsel %vm1085_vm2, %v1411_v13, -inf }
 0x7f4   : > { %1415 = vmax.xlane.f32.xlu1 %v1414_v15 }
 0x805   : > { %1503 = vrot.lane.b32.xlu1 %v3581_v31, %s3138_s23 }
 0x809   : > { %1501 = vrot.lane.b32.xlu1 %v3583_v34, %s3138_s23 }
 0x881   : > { %v1416_v16 = vpop.xlane.xlu1 %1415 }
 0x882   : > { %v1417_v17 = vsub.f32 %v1411_v13, %v1416_v16 }
 0x884   : > { %v1418_v18 = vmul.f32 1.442695, %v1417_v17  ;;  %v1807_v17 = vld [vmem:[#allocation11 + $0x18] sm:$0xff] }
 0x885   : > { %v1504_v24 = vpop.permute.xlu1 %1503 }
 0x886   : > { %2830 = vpow2.f32 %v1418_v18  ;;  %v1804_v18 = vld [vmem:[#allocation11] sm:$0xff] }
 0x889   : > { %v1502_v26 = vpop.permute.xlu1 %1501 }
 0x890   : > { %v2831_v19 = vpop.eup %2830 }
 0x891   : > { %v1420_v20 = vsel %vm1085_vm2, %v2831_v19, 0.0 }
 0x892   : > { %1421 = vadd.xlane.f32.xlu0 %v1420_v20  ;;  %v1806_v20 = vld [vmem:[#allocation11 + $0x10] sm:$0xff] }
 0x8a8   : > { %1425 = vrot.lane.b32.xlu0 %v3597_v37, %s3137_s15 }
 0x91f   : > { %v1422_v21 = vpop.xlane.xlu0 %1421 }
 0x920   : > { %2832 = vrcp.f32 %v1422_v21  ;;  %v1809_v21 = vld [vmem:[#allocation11 + $0x28] sm:$0xff] }
 0x923   : > { %v1426_v22 = vpop.permute.xlu0 %1425 }
 0x924   : > { %2494 = vmatpush3.msra.mxu1 %v1426_v22  ;;  %v1811_v22 = vld [vmem:[#allocation11 + $0x38] sm:$0xff] }
 0x925   : > { %2498 = vmatprep.subr.mxu1 %v3135_v41 }
 0x92a   : > { %v2833_v23 = vpop.eup %2832 }
 0x92b   : > { %v1424_v25 = vmul.f32 %v2833_v23, %v2831_v19  ;;  %v2641_v23 = vpack.c.bf16 %v1806_v20, %v1804_v18  ;;  %v1955_v20 = vld [vmem:[#allocation13 + $0x90] sm:$0xff] }
 0x92d   : > { %2496 = vmatmul.mubr.msk.f32.vlgmr.msra.gmra.mrb[12].mxu1 %vm1085_vm2, %v1424_v25  ;;  %v1808_v25 = vld [vmem:[#allocation11 + $0x20] sm:$0xff] }
 0x92e   : > { %2499 = vmatpush3.xpose.msk.msra.mxu1 %vm1008_vm1, %v1504_v24  ;;  %2500 = vmatprep.mubr.msk.f32.mxu1 %vm3134_vm0, %v3135_v41  ;;  %v2643_v24 = vpack.c.bf16 %v1811_v22, %v1809_v21  ;;  %v1956_v21 = vld [vmem:[#allocation13 + $0x98] sm:$0xff] }
 0x92f   : > { %2503 = vmatprep.subr.mxu1 %v3135_v41  ;;  %v2675_v22 = vpack.c.bf16 %v1956_v21, %v1955_v20 }
 0x931   : > { %2501 = vmatmul.mubr.msk.f32.vlgmr.msra.gmra.mrb[14].mxu1 %vm1008_vm1, %v1502_v26  ;;  %v1810_v26 = vld [vmem:[#allocation11 + $0x30] sm:$0xff] }
 0x932   : > { %2505 = vmatprep.mubr.msk.f32.mxu1 %vm3134_vm0, %v3135_v41 }
 0xa00   : > { %v1497_v27 = vpop.f32.mrb[12].mxu1 }
 0xa01   : > { %v2497_v28 = vpop.f32.mrb[13].mxu1 }
 0xa02   : > { %v1815_v28 = vld [vmem:[#allocation11 + $0x58] sm:$0xff] }
 0xa04   : > { %v1575_v29 = vpop.f32.mrb[14].mxu1 }
 0xa05   : > { %v1576_v30 = vadd.f32 %v3606_v39, %v1575_v29  ;;  %v2502_v31 = vpop.f32.mrb[15].mxu1  ;;  %v2645_v29 = vpack.c.bf16 %v1810_v26, %v1808_v25  ;;  %v1957_v26 = vld [vmem:[#allocation13 + $0xa0] sm:$0xff] }
 0xa06   : > { %v1814_v31 = vld [vmem:[#allocation11 + $0x50] sm:$0xff] }
 0xa07   : > { %v1579_v32 = vsel %vm1085_vm2, %v1576_v30, -inf }
 0xa08   : > { %1580 = vmax.xlane.f32.xlu0 %v1579_v32 }
 0xa1e   : > { %1590 = vrot.lane.b32.xlu0 %v3597_v37, %s3138_s23  ;;  %v1683_v37 = vld [vmem:[#allocation10] sm:$0xff] }
 0xa1f   : > { %v2616_v46 = vpack.c.bf16 %v1684_v44, %v1683_v37  ;;  %v1821_v44 = vld [vmem:[#allocation11 + $0x88] sm:$0xff] }
 0xa21   : > { %2617 = vmatpush3.bf16.msra.mxu0 %v2616_v46  ;;  %v2655_v46 = vpack.c.bf16 %v1823_v45, %v1821_v44  ;;  %v1964_v44 = vld [vmem:[#allocation13 + $0xd8] sm:$0xff] }
 0xa22   : > { %1671 = vrot.lane.b32.xlu0 %v1497_v27, %s3137_s15  ;;  %2618 = vmatprep.subr.bf16.mxu0 %v3133_v4  ;;  %v1813_v27 = vld [vmem:[#allocation11 + $0x48] sm:$0xff]  ;;  %s2049_s15 = scalar_lea.sflag [#allocation4], %s3502_s22 }
 0xa25   : > { %2620 = vmatpush3.bf16.msra.mxu0 %v2619_v48  ;;  %v1822_v48 = vld [vmem:[#allocation11 + $0x90] sm:$0xff] }
 0xa26   : > { %2621 = vmatprep.subr.bf16.mxu0 %v3133_v4  ;;  %v2657_v50 = vpack.c.bf16 %v1822_v48, %v1820_v47  ;;  %v1947_v47 = vld [vmem:[#allocation13 + $0x50] sm:$0xff]  ;;  %v1948_v48 = vld [vmem:[#allocation13 + $0x58] sm:$0xff] }
 0xa29   : > { %2623 = vmatpush3.bf16.msra.mxu0 %v2622_v51  ;;  %v1827_v51 = vld [vmem:[#allocation11 + $0xb8] sm:$0xff] }
 0xa2a   : > { %2624 = vmatprep.subr.bf16.mxu0 %v3133_v4 }
 0xa2d   : > { %2626 = vmatpush3.bf16.msra.mxu0 %v2625_v54  ;;  %v2659_v54 = vpack.c.bf16 %v1827_v51, %v1825_v49  ;;  %v1965_v49 = vld [vmem:[#allocation13 + $0xe0] sm:$0xff]  ;;  %v2693_v51 = vpack.c.bf16 %v1948_v48, %v1947_v47 }
 0xa2e   : > { %2627 = vmatprep.subr.bf16.mxu0 %v3133_v4 }
 0xa95   : > { %v1581_v33 = vpop.xlane.xlu0 %1580 }
 0xa96   : > { %v1582_v34 = vsub.f32 %v1576_v30, %v1581_v33  ;;  %v1812_v30 = vld [vmem:[#allocation11 + $0x40] sm:$0xff] }
 0xa97   : > { %v2649_v32 = vpack.c.bf16 %v1814_v31, %v1812_v30  ;;  %v1959_v31 = vld [vmem:[#allocation13 + $0xb0] sm:$0xff] }
 0xa98   : > { %v1583_v35 = vmul.f32 1.442695, %v1582_v34 }
 0xa99   : > { %v1591_v36 = vpop.permute.xlu0 %1590 }
 0xa9a   : > { %2834 = vpow2.f32 %v1583_v35  ;;  %2504 = vmatpush3.msra.mxu1 %v1591_v36 }
 0xa9d   : > { %v1672_v9 = vpop.permute.xlu0 %1671 }
 0xaa4   : > { %v2835_v38 = vpop.eup %2834 }
 0xaa5   : > { %v1585_v40 = vsel %vm1085_vm2, %v2835_v38, 0.0 }
 0xaa6   : > { %1586 = vadd.xlane.f32.xlu1 %v1585_v40  ;;  %v1819_v40 = vld [vmem:[#allocation11 + $0x78] sm:$0xff] }
 0xab7   : > { %1667 = vrot.lane.b32.xlu1 %v1332_v10, %s3138_s23  ;;  %s3816_s23 = sld [smem:[#allocation29_spill]] }
 0xb33   : > { %v1587_v39 = vpop.xlane.xlu1 %1586 }
 0xb34   : > { %2836 = vrcp.f32 %v1587_v39 }
 0xb37   : > { %v1668_v7 = vpop.permute.xlu1 %1667 }
 0xb38   : > { %v1678_v8 = vsel %vm1008_vm1, %v3621_v55, %v1668_v7  ;;  %v1805_v55 = vld [vmem:[#allocation11 + $0x8] sm:$0xff] }
 0xb39   : > { %v1680_v10 = vsel %vm1679_vm3, %v1678_v8, %v1672_v9  ;;  %v2639_v19 = vpack.c.bf16 %v1807_v17, %v1805_v55  ;;  %v1954_v7 = vld [vmem:[#allocation13 + $0x88] sm:$0xff]  ;;  %v1937_v8 = vld [vmem:[#allocation13] sm:$0xff]  ;;  %v2238_v17 = vld [vmem:[%s3815_s2] ss:$0 sm:$0xff]  ;;  %s3818_s2 = sld [smem:[#allocation31_spill]] }
 0xb3b   : > { %2640 = vmatprep.subr.bf16.mxu1 %v2639_v19 }
 0xb3e   : > { %v2837_v42 = vpop.eup %2836 }
 0xb3f   : > { %v1589_v43 = vmul.f32 %v2837_v42, %v2835_v38  ;;  %v1817_v38 = vld [vmem:[#allocation11 + $0x68] sm:$0xff]  ;;  %v1816_v42 = vld [vmem:[#allocation11 + $0x60] sm:$0xff] }
 0xb40   : > { %v2651_v39 = vpack.c.bf16 %v1819_v40, %v1817_v38  ;;  %v1962_v40 = vld [vmem:[#allocation13 + $0xc8] sm:$0xff] }
 0xb41   : > { %2506 = vmatmul.mubr.msk.f32.vlgmr.msra.gmra.mrb[16].mxu1 %vm1085_vm2, %v1589_v43  ;;  %v1818_v43 = vld [vmem:[#allocation11 + $0x70] sm:$0xff] }
 0xb42   : > { %1912 = vmatprep.mubr.f32.mxu1 %v3135_v41  ;;  %v1691_v41 = vld [vmem:[#allocation10 + $0x40] sm:$0xff]  ;;  %2642 = vmatpush1.bf16.msra.mxu1 %v2641_v23  ;;  %v2653_v37 = vpack.c.bf16 %v1818_v43, %v1816_v42  ;;  %v1939_v23 = vld [vmem:[#allocation13 + $0x10] sm:$0xff]  ;;  %v1946_v42 = vld [vmem:[#allocation13 + $0x48] sm:$0xff] }
 0xb43   : > { %v2628_v57 = vpack.c.bf16 %v1692_v56, %v1691_v41  ;;  %2644 = vmatprep.subr.bf16.mxu1 %v2643_v24  ;;  %v1829_v41 = vld [vmem:[#allocation11 + $0xc8] sm:$0xff]  ;;  %v1831_v56 = vld [vmem:[#allocation11 + $0xd8] sm:$0xff] }
 0xb44   : > { %v2663_v58 = vpack.c.bf16 %v1831_v56, %v1829_v41  ;;  %v1940_v24 = vld [vmem:[#allocation13 + $0x18] sm:$0xff]  ;;  %v1967_v41 = vld [vmem:[#allocation13 + $0xf0] sm:$0xff] }
 0xb45   : > { %2629 = vmatpush3.bf16.msra.mxu0 %v2628_v57  ;;  %v2661_v57 = vpack.c.bf16 %v1826_v53, %v1824_v52  ;;  %v2677_v25 = vpack.c.bf16 %v1940_v24, %v1939_v23  ;;  %v1949_v53 = vld [vmem:[#allocation13 + $0x60] sm:$0xff]  ;;  %v1968_v56 = vld [vmem:[#allocation13 + $0xf8] sm:$0xff] }
 0xb46   : > { %2630 = vmatprep.subr.bf16.mxu0 %v3133_v4  ;;  %2646 = vmatpush1.bf16.msra.mxu1 %v2645_v29  ;;  %v1941_v29 = vld [vmem:[#allocation13 + $0x20] sm:$0xff] }
 0xb49   : > { %2632 = vmatpush3.bf16.msra.mxu0 %v2631_v60  ;;  %v1830_v60 = vld [vmem:[#allocation11 + $0xd0] sm:$0xff] }
 0xb4a   : > { %2633 = vmatprep.subr.bf16.mxu0 %v3133_v4 }
 0xb4d   : > { %2635 = vmatpush3.bf16.msra.mxu0 %v2634_v63  ;;  %v2665_v63 = vpack.c.bf16 %v1830_v60, %v1828_v59  ;;  %v1951_v59 = vld [vmem:[#allocation13 + $0x70] sm:$0xff]  ;;  %v1952_v60 = vld [vmem:[#allocation13 + $0x78] sm:$0xff] }
 0xb4e   : > { %2636 = vmatprep.subr.bf16.mxu0 %v3133_v4  ;;  %v2236_v4 = vld [vmem:[%s3813_s13] ss:$0 sm:$0xff]  ;;  %v2701_v61 = vpack.c.bf16 %v1952_v60, %v1951_v59  ;;  %s3817_s13 = sld [smem:[#allocation30_spill]] }
 0xb51   : > { %2638 = vmatpush3.bf16.msra.mxu0 %v2637_v3  ;;  %v1834_v3 = vld [vmem:[#allocation11 + $0xf0] sm:$0xff] }
 0xc14   : > { %v1662_v5 = vpop.f32.mrb[16].mxu1 }
 0xc15   : > { %1675 = vrot.lane.b32.xlu1 %v1662_v5, %s3136_s11  ;;  %v2507_v6 = vpop.f32.mrb[17].mxu1  ;;  %v2669_v5 = vpack.c.bf16 %v1834_v3, %v1832_v2  ;;  %v1836_v2 = vld [vmem:[%s3816_s23] sm:$0x3]  ;;  %s2241_s11 = sshll.u32 %s3256_s1, 7  ;;  %s3139_s1 = smov [#allocation14]  }
 0xc16   : > { %v1953_v6 = vld [vmem:[#allocation13 + $0x80] sm:$0xff]  ;;  %s3705_s25 = scalar_lea.hbm %s3818_s2, %s2241_s11  ;;  %s3046_s12 = sshll.u32 %s3139_s1, 4  ;;  %s3047_s12 = int_to_ptr.vmem [resolvable:$false] %s3046_s12 }
 0xc17   : > { %v2671_v9 = vpack.c.bf16 %v1954_v7, %v1953_v6  ;;  %s3048_s9 = scalar_lea.vmem %s3047_s12, 256 }
 0xc19   : > { %2672 = vmatprep.subr.bf16.mxu0 %v2671_v9 }
 0xc87   : > { %v1676_v11 = vpop.permute.xlu1 %1675 }
 0xc88   : > { %v1682_v12 = vsel %vm1681_vm4, %v1680_v10, %v1676_v11  ;;  %v1938_v10 = vld [vmem:[#allocation13 + $0x8] sm:$0xff] }
 0xc89   : > { %2541 = vmatmul.mubr.f32.vlgmr.msra.gmra.mrb[4].mxu0 %v1682_v12  ;;  %v2673_v11 = vpack.c.bf16 %v1938_v10, %v1937_v8 }
 0xc8b   : > { %2674 = vmatpush3.bf16.msra.mxu0 %v2673_v11 }
 0xc8c   : > { %2676 = vmatprep.subr.bf16.mxu0 %v2675_v22 }
 0xc8f   : > { %2678 = vmatpush3.bf16.msra.mxu0 %v2677_v25 }
 0xd5c   : > { %v1772_v13 = vpop.f32.mrb[4].mxu0 }
 0xd5d   : > { %v1773_v14 = vadd.f32 %v2236_v4, %v1772_v13  ;;  %v2542_v15 = vpop.f32.mrb[5].mxu0 }
 0xd5e   : > { %v2237_v15 = vld [vmem:[%s3814_s18] ss:$0 sm:$0xff]  ;;  %s2062_s18 = sshll.u32 %s688_s20, 4  ;;  %s3707_s18 = int_to_ptr.vmem [resolvable:$true] %s2062_s18 }
 0xd5f   : > { %v3682_v16 = vadd.f32 %v1773_v14, %v3524_v0  ;;  %v2647_v0 = vpack.c.bf16 %v1815_v28, %v1813_v27  ;;  %v1958_v27 = vld [vmem:[#allocation13 + $0xa8] sm:$0xff]  ;;  %s3042_s23 = scalar_lea.vmem %s3707_s18, 128  ;;  %p3049_p0 = scmp.lt.s32.totalorder %s3707_s18, %s3047_s12 }
 0xd60   : > { %v2679_v28 = vpack.c.bf16 %v1958_v27, %v1957_v26  ;;  %p3043_p9 = scmp.ne.s32.totalorder %s3707_s18, %s3042_s23  ;;  %p3050_p2 = scmp.lt.s32.totalorder %s3048_s9, %s3042_s23 }
 0xd61   : > { %1779 = vadd.xlane.f32.xlu0 %v3682_v16  ;;  %2648 = vmatprep.subr.bf16.mxu1 %v2647_v0  ;;  %v1942_v0 = vld [vmem:[#allocation13 + $0x28] sm:$0xff] }
 0xd62   : > { %2650 = vmatpush1.bf16.msra.mxu1 %v2649_v32  ;;  %v2681_v30 = vpack.c.bf16 %v1942_v0, %v1941_v29  ;;  %2680 = vmatprep.subr.bf16.mxu0 %v2679_v28  ;;  %v1960_v32 = vld [vmem:[#allocation13 + $0xb8] sm:$0xff]  ;;  %v2239_v29 = vld [vmem:[%s3817_s13] ss:$0 sm:$0xff]  ;;  %p3044_p1 = pnand %p3043_p9, %p3819_p12  ;;  %p3051_p3 = por %p3050_p2, %p3049_p0 }
 0xd63   : > { %2652 = vmatprep.subr.bf16.mxu1 %v2651_v39  ;;  %v1945_v39 = vld [vmem:[#allocation13 + $0x40] sm:$0xff] }
 0xd64   : > { %2682 = vmatpush3.bf16.msra.mxu0 %v2681_v30  ;;  %v2689_v45 = vpack.c.bf16 %v1946_v42, %v1945_v39  ;;  %p3045_p13 = pneg %p3044_p1 }
 0xd66   : > { %2654 = vmatpush1.bf16.msra.mxu1 %v2653_v37  ;;  %v1963_v37 = vld [vmem:[#allocation13 + $0xd0] sm:$0xff]  ;;  %p3052_p4 = pnand %p3051_p3, %p3045_p13 }
 0xd67   : > { %2656 = vmatprep.subr.bf16.mxu1 %v2655_v46  ;;  %v2691_v46 = vpack.c.bf16 %v1964_v44, %v1963_v37 }
 0xd6a   : > { %2658 = vmatpush1.bf16.msra.mxu1 %v2657_v50  ;;  %v1966_v50 = vld [vmem:[#allocation13 + $0xe8] sm:$0xff] }
 0xd6b   : > { %2660 = vmatprep.subr.bf16.mxu1 %v2659_v54  ;;  %v2695_v52 = vpack.c.bf16 %v1966_v50, %v1965_v49  ;;  %v1950_v54 = vld [vmem:[#allocation13 + $0x68] sm:$0xff] }
 0xd6e   : > { %2662 = vmatpush1.bf16.msra.mxu1 %v2661_v57  ;;  %v2697_v57 = vpack.c.bf16 %v1950_v54, %v1949_v53 }
 0xd6f   : > { %2664 = vmatprep.subr.bf16.mxu1 %v2663_v58  ;;  %v2699_v58 = vpack.c.bf16 %v1968_v56, %v1967_v41 }
 0xd72   : > { %2666 = vmatpush1.bf16.msra.mxu1 %v2665_v63  ;;  %v1839_v63 = vshrl.u32 %v1838_v62, 7 }
 0xd73   : > { %2668 = vmatprep.subr.bf16.mxu1 %v2667_v1 }
 0xd74   : > { %v1840_v1 = vsub.s32 0, %v1839_v63  ;;  %v1844_v3 = vsub.s32 1, %v1839_v63 }
 0xd76   : > { %2670 = vmatpush1.bf16.msra.mxu1 %v2669_v5  ;;  %v1841_v5 = vrot.slane %v1836_v2, %v1840_v1  ;;  %v1845_v6 = vrot.slane %v1836_v2, %v1844_v3 }
 0xdee   : > { %v1780_v33 = vpop.xlane.xlu0 %1779 }
 0xdef   : > { %v1781_v34 = vmul.f32 0.0078125, %v1780_v33  ;;  %v2683_v33 = vpack.c.bf16 %v1960_v32, %v1959_v31 }
 0xdf1   : > { %v1782_v35 = vsub.f32 %v3682_v16, %v1781_v34  ;;  %v1943_v34 = vld [vmem:[#allocation13 + $0x30] sm:$0xff]  ;;  %2684 = vmatprep.subr.bf16.mxu0 %v2683_v33 }
 0xdf3   : > { %v1783_v36 = vmul.f32 %v1782_v35, %v1782_v35 }
 0xdf5   : > { %1784 = vadd.xlane.f32.xlu1 %v1783_v36  ;;  %v1961_v36 = vld [vmem:[#allocation13 + $0xc0] sm:$0xff] }
 0xdf6   : > { %v2687_v43 = vpack.c.bf16 %v1962_v40, %v1961_v36 }
 0xe82   : > { %v1785_v12 = vpop.xlane.xlu1 %1784 }
 0xe83   : > { %v1786_v4 = vmul.f32 0.0078125, %v1785_v12 }
 0xe85   : > { %v1787_v13 = vadd.f32 1e-06, %v1786_v4 }
 0xe87   : > { %2838 = vrsqrt.f32 %v1787_v13 }
 0xe91   : > { %v2839_v14 = vpop.eup %2838 }
 0xe92   : > { %v1789_v55 = vmul.f32 %v2839_v14, %v1782_v35  ;;  %v1944_v35 = vld [vmem:[#allocation13 + $0x38] sm:$0xff] }
 0xe93   : > { %v2685_v38 = vpack.c.bf16 %v1944_v35, %v1943_v34 }
 0xe94   : > { %v1796_v18 = vmul.f32 %v2237_v15, %v1789_v55 }
 0xe95   : > { %2686 = vmatpush3.bf16.msra.mxu0 %v2685_v38 }
 0xe96   : > { %v1803_v19 = vadd.f32 %v2238_v17, %v1796_v18  ;;  %2688 = vmatprep.subr.bf16.mxu0 %v2687_v43 }
 0xe98   : > { %1913 = vmatmul.mubr.f32.vlgmr.msra.gmra.mrb[18].mxu1 %v1803_v19 }
 0xe99   : > { %2690 = vmatpush3.bf16.msra.mxu0 %v2689_v45 }
 0xe9a   : > { %2692 = vmatprep.subr.bf16.mxu0 %v2691_v46 }
 0xe9d   : > { %2694 = vmatpush3.bf16.msra.mxu0 %v2693_v51 }
 0xe9e   : > { %2696 = vmatprep.subr.bf16.mxu0 %v2695_v52 }
 0xea1   : > { %2698 = vmatpush3.bf16.msra.mxu0 %v2697_v57 }
 0xea2   : > { %2700 = vmatprep.subr.bf16.mxu0 %v2699_v58 }
 0xea5   : > { %2702 = vmatpush3.bf16.msra.mxu0 %v2701_v61 }
 0xf6b   : > { %v1914_v7 = vpop.f32.mrb[18].mxu1 }
 0xf6c   : > { %v1915_v8 = vadd.f32 %v1914_v7, %v1841_v5  ;;  %v1916_v9 = vpop.f32.mrb[19].mxu1 }
 0xf6d   : > { %v1917_v10 = vadd.f32 %v1916_v9, %v1845_v6 }
 0xf6e   : > { %v1921_v11 = vmul.f32 0.044715, %v1915_v8  ;;  %v1919_v25 = vmul.f32 0.5, %v1915_v8 }
 0xf6f   : > { %v1922_v12 = vmul.f32 0.044715, %v1917_v10  ;;  %v1920_v23 = vmul.f32 0.5, %v1917_v10 }
 0xf70   : > { %v1923_v4 = vmul.f32 %v1921_v11, %v1915_v8 }
 0xf71   : > { %v1924_v13 = vmul.f32 %v1922_v12, %v1917_v10 }
 0xf72   : > { %v1925_v14 = vmul.f32 %v1923_v4, %v1915_v8 }
 0xf73   : > { %v1926_v15 = vmul.f32 %v1924_v13, %v1917_v10 }
 0xf74   : > { %v1927_v55 = vadd.f32 %v1925_v14, %v1915_v8 }
 0xf75   : > { %v1928_v17 = vadd.f32 %v1926_v15, %v1917_v10 }
 0xf76   : > { %v1929_v18 = vmul.f32 0.7978846, %v1927_v55 }
 0xf77   : > { %v1930_v19 = vmul.f32 0.7978846, %v1928_v17 }
 0xf78   : > { %2840 = vtanh.f32 %v1929_v18 }
 0xf79   : > { %2842 = vtanh.f32 %v1930_v19 }
 0xf82   : > { %v2841_v20 = vpop.eup %2840 }
 0xf83   : > { %v2843_v21 = vpop.eup %2842  ;;  %v1933_v22 = vadd.f32 1.0, %v2841_v20 }
 0xf84   : > { %v1934_v24 = vadd.f32 1.0, %v2843_v21 }
 0xf85   : > { %v1935_v27 = vmul.f32 %v1933_v22, %v1919_v25 }
 0xf86   : > { %v1936_v26 = vmul.f32 %v1934_v24, %v1920_v23 }
 0xf88   : > { %2040 = vmatprep.mubr.f32.mxu0 %v1936_v26 }
 0xf89   : > { %2041 = vmatmul.mubr.f32.vlgmr.msra.gmra.mrb[6].mxu0 %v1935_v27 }
0x105c   : > { %v2360_v28 = vpop.f32.mrb[6].mxu0 }
0x105d   : > { %v2361_v0 = vpop.f32.mrb[7].mxu0 }
0x105e   : > { %v2362_v30 = vadd.f32 %v2361_v0, %v2360_v28 }
0x1060   : > { %v2043_v31 = vadd.f32 %v2362_v30, %v2239_v29 }
0x1062   : > { %v2046_v32 = vadd.f32 %v2043_v31, %v3682_v16 }
0x1064   : > { %2047 = vst [vmem:[%s688_s20] sm:$0xff] %v2046_v32 }
0x1065   : > { %3055 = shalt.err (!%p3052_p4)
}
0x1066   : > { %s3056_s22 = scalar_lea.hbm %s3705_s25, 128  ;;  %s3060_s11 = scalar_lea.hbm %s3818_s2, 256 }
0x1067   : > { %p3057_p10 = scmp.ne.s32.totalorder %s3705_s25, %s3056_s22  ;;  %p3061_p5 = scmp.lt.u32.totalorder %s3705_s25, %s3818_s2 }
0x1068   : > { %p3062_p7 = scmp.lt.u32.totalorder %s3060_s11, %s3056_s22  ;;  %p3064_p9 = scmp.lt.u32.totalorder %s3056_s22, %s3705_s25 }
0x1069   : > { %p3058_p11 = pnand %p3057_p10, %p3819_p12 }
0x106a   : > { %p3063_p6 = por %p3062_p7, %p3061_p5 }
0x106b   : > { %p3059_p8 = pneg %p3058_p11 }
0x106c   : > { %p3065_p1 = por %p3064_p9, %p3063_p6 }
0x106e   : > { %p3066_p13 = pnand %p3065_p1, %p3059_p8 }
0x1070   : > { %3069 = shalt.err (!%p3066_p13)
}
0x1071   : > { %2729 = dma.vmem_to_hbm [thread:$0]  (%p3819_p12), %s3707_s18, 128, %s3705_s25, %s2049_s15  }
0x1072 PF: > { %s2074_s17 = sand.u32 1, %s3108_s27   ;;  %p3820_p0 = scmp.ne.s32.totalorder %s3800_s19, 0 }
0x1073   : > { %p3821_p2 = scmp.ge.s32.totalorder %s3120_s30, 2  ;;  %s2075_s23 = scalar_lea.sflag [#allocation4], %s2074_s17 }
0x1075   : > { %p2755_p3 = pnand %p3821_p2, %p3820_p0 }
0x1077   : > { %3103 = dma.done.wait (!%p2755_p3), %s2075_s23, 128  }
0x1078   : > { %3105 = vsyncadd (!%p2755_p3), %s2075_s23, 4294967168  ;;  %p34_p4 = scmp.ge.s32.totalorder %s3426_s21, 4   ;;  %s3822_s27 = smov %s3112_s28 }
0x1079   : > { %s3823_s28 = smov %s3116_s29  ;;  %s3824_s29 = smov %s3437_s24 }
0x107a   : > { %s3825_s30 = smov %s3426_s21  ;;  %36 = sbr.rel (!%p34_p4) target bundleno = 21 (0x15), region = 164 }
0x1081   :  { %2080 = vsyncpa [#allocation3], 1 }
0x1082   :  { %2082 = vsyncpa [#allocation3 + $0x1], 1 }
0x1083   :  { %2083 = vsyncpa [#allocation6], 1 }
0x1084   :  { %2084 = vsyncpa [#allocation9], 1 }
0x1085   :  { %2085 = vsyncpa [#allocation12], 1 }
0x1086   :  { %2086 = vsyncpa [#allocation4], 1 }
0x1087   :  { %2088 = vsyncpa [#allocation4 + $0x1], 1 }

</bundles_post_ra>
